<compile_context>
chip_gen: v5e
topology: v5e:2x2
jax: 0.10.0
libtpu: 0.0.40
codegen_flags: <defaults>
</compile_context>

<pallas_src>
import functools
import math

import jax
import jax.numpy as jnp
from jax import lax
from jax.experimental import pallas as pl
from jax.experimental.pallas import tpu as pltpu

LN_EPS = 1e-5  # torch.nn.LayerNorm default eps


def _layernorm(x, gamma, beta):
    # x: (M, D); gamma/beta broadcastable (1, D)
    mu = jnp.mean(x, axis=-1, keepdims=True)
    var = jnp.mean((x - mu) ** 2, axis=-1, keepdims=True)
    return (x - mu) * lax.rsqrt(var + LN_EPS) * gamma + beta


def _gelu_exact(x):
    # torch.nn.GELU default: exact erf formulation
    return 0.5 * x * (1.0 + lax.erf(x * (1.0 / math.sqrt(2.0))))


# ------------------------------------------------------------------ kernel

def decoder_kernel(x_ref, pos_ref,
                   ln1g_ref, ln1b_ref, wqkv_ref, wo_ref,
                   ln2g_ref, ln2b_ref, w1_ref, b1_ref, w2_ref, b2_ref,
                   ng_ref, nb_ref, wh_ref, bh_ref,
                   o_ref,
                   x_vmem,
                   *, num_heads, batch_tile):
    """One (batch-tile, layer) grid step of the fused ViT decoder."""
    layer = pl.program_id(1)
    n_layers = pl.num_programs(1)

    bt = batch_tile
    _, N, D = x_ref.shape
    M = bt * N
    nh = num_heads
    hd = D // nh
    bf16 = jnp.bfloat16
    f32 = jnp.float32

    # Fold the positional-embedding add into layer 0; the residual stream then
    # stays resident in VMEM for the whole depth sweep (no HBM round trips).
    @pl.when(layer == 0)
    def _():
        x_vmem[...] = (x_ref[...] + pos_ref[...]).reshape(M, D)

    x = x_vmem[...]                                   # (M, D) f32 residual

    # --- attention branch -------------------------------------------------
    xn = _layernorm(x, ln1g_ref[0], ln1b_ref[0]).astype(bf16)          # (M, D)
    # ONE fused QKV projection (1/sqrt(hd) already folded into the q columns).
    qkv = jnp.dot(xn, wqkv_ref[0], preferred_element_type=f32)         # (M, 3D)
    qkv = qkv.astype(bf16).reshape(bt, N, 3 * D)                       # (bt,N,3D)

    ctx_heads = []
    for h in range(nh):                 # static unroll over heads
        c0 = h * hd
        q_h = qkv[:, :, c0:c0 + hd]                                    # (bt,N,hd)
        k_h = qkv[:, :, D + c0:D + c0 + hd]
        v_h = qkv[:, :, 2 * D + c0:2 * D + c0 + hd]
        # scores: (bt,N,hd) x (bt,N,hd) -> (bt,N,N); batch over images.
        s = lax.dot_general(q_h, k_h, (((2,), (2,)), ((0,), (0,))),
                            preferred_element_type=f32)
        s = s - jnp.max(s, axis=-1, keepdims=True)
        p = jnp.exp(s)
        p = p * pl.reciprocal(jnp.sum(p, axis=-1, keepdims=True), approx=True)
        # context: (bt,N,N) x (bt,N,hd) -> (bt,N,hd)
        ctx_h = lax.dot_general(p.astype(bf16), v_h,
                                (((2,), (1,)), ((0,), (0,))),
                                preferred_element_type=f32)
        ctx_heads.append(ctx_h.astype(bf16))

    # Reassemble heads along lanes in registers (no VMEM scratch round trip),
    # then ONE full-K lane-dense output projection.
    ctx = jnp.concatenate(ctx_heads, axis=-1).reshape(M, D)            # bf16
    attn = jnp.dot(ctx, wo_ref[0], preferred_element_type=f32)
    x = x + attn

    # --- MLP branch ---------------------------------------------------------
    xn2 = _layernorm(x, ln2g_ref[0], ln2b_ref[0]).astype(bf16)
    h1 = jnp.dot(xn2, w1_ref[0], preferred_element_type=f32) + b1_ref[0]
    h1 = _gelu_exact(h1).astype(bf16)
    h2 = jnp.dot(h1, w2_ref[0], preferred_element_type=f32) + b2_ref[0]
    x = x + h2
    x_vmem[...] = x

    # --- final LayerNorm + linear head, fused into the last layer ----------
    @pl.when(layer == n_layers - 1)
    def _():
        xf = _layernorm(x, ng_ref[...], nb_ref[...]).astype(bf16)
        y = jnp.dot(xf, wh_ref[...], preferred_element_type=f32) + bh_ref[...]
        o_ref[...] = y.reshape(bt, N, y.shape[-1])


# ------------------------------------------------------------------ wrapper

def _pick_batch_tile(B, max_bt=4):
    for bt in range(min(B, max_bt), 0, -1):
        if B % bt == 0:
            return bt
    return 1


def _default_vmem_limit():
    phys = None
    try:
        info = pltpu.get_tpu_info()
        phys = getattr(info, "vmem_capacity_bytes", None)
    except Exception:
        phys = None
    if not phys:
        phys = 128 * 1024 * 1024
    # ~3/4 of physical VMEM, capped: 96 MiB on v5e/v6e, 48 MiB on v7x.
    return int(min(phys * 3 // 4, 112 * 1024 * 1024))


def vit_decoder_forward(x, params, cfg, *, max_batch_tile=4):
    B, N, D = x.shape
    depth = cfg["depth"]
    nh = cfg["num_heads"]
    hd = D // nh
    O = cfg["patch_size"] ** 2 * cfg["output_ch"]
    bf16 = jnp.bfloat16

    # Batch tile: bt images share each per-layer weight fetch and all matmul
    # M dims become bt*N.  (On v7x prefer B/bt even so both TCs stay busy.)
    bt = _pick_batch_tile(B, max_batch_tile)

    def stack(key):
        return jnp.stack([blk[key] for blk in params["blocks"]], axis=0)

    # Per-layer parameters stacked along a leading depth axis (layout plumbing
    # done once in plain JAX).  QKV weights fused into one (D, 3D) matrix with
    # the attention scale folded into the q columns.
    scale = 1.0 / math.sqrt(hd)
    ln1_g, ln1_b = stack("ln1_g"), stack("ln1_b")            # (depth, 1, D) f32
    ln2_g, ln2_b = stack("ln2_g"), stack("ln2_b")
    wqkv = jnp.concatenate([stack("wq") * scale, stack("wk"), stack("wv")],
                           axis=-1).astype(bf16)             # (depth, D, 3D)
    wo = stack("wo").astype(bf16)                            # (depth, D, D)
    w1 = stack("w1").astype(bf16)                            # (depth, D, H)
    b1 = stack("b1")                                         # (depth, 1, H) f32
    w2 = stack("w2").astype(bf16)                            # (depth, H, D)
    b2 = stack("b2")                                         # (depth, 1, D) f32

    pos = params["pos"]                                      # (1, N, D) f32
    ng, nb = params["norm"]["g"], params["norm"]["b"]        # (1, D) f32
    wh = params["head"]["wh"].astype(bf16)                   # (D, O)
    bh = params["head"]["bh"]                                # (1, O) f32

    def per_layer_spec(a):
        nz = a.ndim - 1
        return pl.BlockSpec((1,) + a.shape[1:],
                            lambda i, l, _n=nz: (l,) + (0,) * _n)

    def const_spec(a):
        return pl.BlockSpec(a.shape, lambda i, l, _n=a.ndim: (0,) * _n)

    per_layer = [ln1_g, ln1_b, wqkv, wo, ln2_g, ln2_b, w1, b1, w2, b2]
    consts = [ng, nb, wh, bh]

    y = pl.pallas_call(
        functools.partial(decoder_kernel, num_heads=nh, batch_tile=bt),
        out_shape=jax.ShapeDtypeStruct((B, N, O), jnp.float32),
        grid=(B // bt, depth),
        in_specs=([pl.BlockSpec((bt, N, D), lambda i, l: (i, 0, 0)),
                   const_spec(pos)]
                  + [per_layer_spec(a) for a in per_layer]
                  + [const_spec(a) for a in consts]),
        out_specs=pl.BlockSpec((bt, N, O), lambda i, l: (i, 0, 0)),
        scratch_shapes=[pltpu.VMEM((bt * N, D), jnp.float32)],  # residual
        compiler_params=pltpu.CompilerParams(
            dimension_semantics=("parallel", "arbitrary"),
            vmem_limit_bytes=_default_vmem_limit()),
    )(x, pos, *per_layer, *consts)

    # glue: un-patchify  (B, N, P*P*C) -> (B, C, H, W) -- pure data layout,
    # matches the torch view / permute / reshape sequence.
    P = cfg["patch_size"]
    C = cfg["output_ch"]
    Ph = cfg["img_size"] // P
    y = y.reshape(B, Ph, Ph, P, P, C)
    y = jnp.transpose(y, (0, 5, 1, 3, 2, 4))
    return y.reshape(B, C, cfg["img_size"], cfg["img_size"])


# ------------------------------------------------------------------ params

def init_decoder_params(key, cfg):
    D = cfg["embed_dim"]
    H = int(D * cfg["mlp_ratio"])
    O = cfg["patch_size"] ** 2 * cfg["output_ch"]
    kpos, khead, *kblocks = jax.random.split(key, cfg["depth"] + 2)

    def w(k, shape, scale=0.02):
        return scale * jax.random.normal(k, shape, jnp.float32)

    pos = 0.02 * jax.random.truncated_normal(
        kpos, -2.0, 2.0, (1, cfg["num_patches"], D), jnp.float32)

    blocks = []
    for kb in kblocks:
        ks = jax.random.split(kb, 6)
        blocks.append(dict(
            ln1_g=jnp.ones((1, D), jnp.float32), ln1_b=jnp.zeros((1, D), jnp.float32),
            wq=w(ks[0], (D, D)), wk=w(ks[1], (D, D)), wv=w(ks[2], (D, D)),
            wo=w(ks[3], (D, D)),
            ln2_g=jnp.ones((1, D), jnp.float32), ln2_b=jnp.zeros((1, D), jnp.float32),
            w1=w(ks[4], (D, H)), b1=jnp.zeros((1, H), jnp.float32),
            w2=w(ks[5], (H, D)), b2=jnp.zeros((1, D), jnp.float32),
        ))

    norm = dict(g=jnp.ones((1, D), jnp.float32), b=jnp.zeros((1, D), jnp.float32))
    head = dict(wh=w(khead, (D, O)), bh=jnp.zeros((1, O), jnp.float32))
    return dict(pos=pos, blocks=blocks, norm=norm, head=head)


# ------------------------------------------------------------------ reference

def _ref_ln(x, g, b):
    mu = jnp.mean(x, axis=-1, keepdims=True)
    var = jnp.mean((x - mu) ** 2, axis=-1, keepdims=True)
    return (x - mu) / jnp.sqrt(var + LN_EPS) * g + b


def reference_forward(x, params, cfg):
    x = x + params["pos"]
    nh = cfg["num_heads"]
    for p in params["blocks"]:
        B, N, D = x.shape
        hd = D // nh
        xn = _ref_ln(x, p["ln1_g"], p["ln1_b"])
        q = (xn @ p["wq"]).reshape(B, N, nh, hd)
        k = (xn @ p["wk"]).reshape(B, N, nh, hd)
        v = (xn @ p["wv"]).reshape(B, N, nh, hd)
        s = jnp.einsum("bqhd,bkhd->bhqk", q, k) / math.sqrt(hd)
        a = jax.nn.softmax(s, axis=-1)
        o = jnp.einsum("bhqk,bkhd->bqhd", a, v).reshape(B, N, D) @ p["wo"]
        x = x + o
        xn2 = _ref_ln(x, p["ln2_g"], p["ln2_b"])
        h = jax.nn.gelu(xn2 @ p["w1"] + p["b1"], approximate=False)
        x = x + (h @ p["w2"] + p["b2"])
    x = _ref_ln(x, params["norm"]["g"], params["norm"]["b"])
    y = x @ params["head"]["wh"] + params["head"]["bh"]
    B = y.shape[0]
    P, C, Ph = cfg["patch_size"], cfg["output_ch"], cfg["img_size"] // cfg["patch_size"]
    y = y.reshape(B, Ph, Ph, P, P, C)
    y = jnp.transpose(y, (0, 5, 1, 3, 2, 4))
    return y.reshape(B, C, cfg["img_size"], cfg["img_size"])


# ------------------------------------------------------------------ main

if __name__ == "__main__":
    cfg = dict(img_size=16, patch_size=4, output_ch=3, embed_dim=32,
               depth=2, num_heads=4, mlp_ratio=4.0)
    cfg["num_patches"] = (cfg["img_size"] // cfg["patch_size"]) ** 2  # 16

    key = jax.random.PRNGKey(0)
    k_x, k_p = jax.random.split(key)
    B = 2
    # Decoder input: token sequence (B, num_patches, embed_dim)
    x = jax.random.normal(k_x, (B, cfg["num_patches"], cfg["embed_dim"]), jnp.float32)
    params = init_decoder_params(k_p, cfg)

    out = jax.block_until_ready(vit_decoder_forward(x, params, cfg))
    ref = jax.block_until_ready(reference_forward(x, params, cfg))

    assert out.shape == (B, cfg["output_ch"], cfg["img_size"], cfg["img_size"])
    # bf16 matmul inputs (f32 accumulation) vs full-f32 reference -> loose tol.
    assert jnp.allclose(out, ref, rtol=2e-2, atol=2e-2), \
        f"max abs err {jnp.max(jnp.abs(out - ref))}"

    print("KERNEL_OK")
</pallas_src>

<mosaic_0001>
module attributes {stable_mosaic.version = 11 : i64} {
  func.func @decoder_kernel(%arg0: i32, %arg1: i32, %arg2: memref<2x16x32xf32, #tpu.memory_space<vmem>>, %arg3: memref<1x16x32xf32, #tpu.memory_space<vmem>>, %arg4: memref<1x1x32xf32, #tpu.memory_space<vmem>>, %arg5: memref<1x1x32xf32, #tpu.memory_space<vmem>>, %arg6: memref<1x32x96xbf16, #tpu.memory_space<vmem>>, %arg7: memref<1x32x32xbf16, #tpu.memory_space<vmem>>, %arg8: memref<1x1x32xf32, #tpu.memory_space<vmem>>, %arg9: memref<1x1x32xf32, #tpu.memory_space<vmem>>, %arg10: memref<1x32x128xbf16, #tpu.memory_space<vmem>>, %arg11: memref<1x1x128xf32, #tpu.memory_space<vmem>>, %arg12: memref<1x128x32xbf16, #tpu.memory_space<vmem>>, %arg13: memref<1x1x32xf32, #tpu.memory_space<vmem>>, %arg14: memref<1x32xf32, #tpu.memory_space<vmem>>, %arg15: memref<1x32xf32, #tpu.memory_space<vmem>>, %arg16: memref<32x48xbf16, #tpu.memory_space<vmem>>, %arg17: memref<1x48xf32, #tpu.memory_space<vmem>>, %arg18: memref<2x16x48xf32, #tpu.memory_space<vmem>>, %arg19: memref<32x32xf32, #tpu.memory_space<vmem>>) attributes {dimension_semantics = [#tpu.dimension_semantics<parallel>, #tpu.dimension_semantics<arbitrary>], iteration_bounds = array<i64: 1, 2>, scalar_prefetch = 0 : i64, scratch_operands = 1 : i64, tpu.core_type = #tpu.core_type<tc>, window_params = [{transform_indices = @transform_0, window_bounds = array<i64: 2, 16, 32>}, {pipeline_mode = #tpu.pipeline_mode<synchronous>, transform_indices = @transform_1, window_bounds = array<i64: 1, 16, 32>}, {transform_indices = @transform_2, window_bounds = array<i64: 1, 1, 32>}, {transform_indices = @transform_3, window_bounds = array<i64: 1, 1, 32>}, {transform_indices = @transform_4, window_bounds = array<i64: 1, 32, 96>}, {transform_indices = @transform_5, window_bounds = array<i64: 1, 32, 32>}, {transform_indices = @transform_6, window_bounds = array<i64: 1, 1, 32>}, {transform_indices = @transform_7, window_bounds = array<i64: 1, 1, 32>}, {transform_indices = @transform_8, window_bounds = array<i64: 1, 32, 128>}, {transform_indices = @transform_9, window_bounds = array<i64: 1, 1, 128>}, {transform_indices = @transform_10, window_bounds = array<i64: 1, 128, 32>}, {transform_indices = @transform_11, window_bounds = array<i64: 1, 1, 32>}, {pipeline_mode = #tpu.pipeline_mode<synchronous>, transform_indices = @transform_12, window_bounds = array<i64: 1, 32>}, {pipeline_mode = #tpu.pipeline_mode<synchronous>, transform_indices = @transform_13, window_bounds = array<i64: 1, 32>}, {pipeline_mode = #tpu.pipeline_mode<synchronous>, transform_indices = @transform_14, window_bounds = array<i64: 32, 48>}, {pipeline_mode = #tpu.pipeline_mode<synchronous>, transform_indices = @transform_15, window_bounds = array<i64: 1, 48>}, {transform_indices = @transform_16, window_bounds = array<i64: 2, 16, 48>}]} {
    %c0_i32 = arith.constant 0 : i32
    %0 = arith.cmpi eq, %arg1, %c0_i32 : i32
    %1 = arith.extui %0 : i1 to i32
    %c0_i32_0 = arith.constant 0 : i32
    %2 = arith.cmpi ne, %1, %c0_i32_0 : i32
    scf.if %2 {
      %c0_67 = arith.constant 0 : index
      %c0_68 = arith.constant 0 : index
      %c0_69 = arith.constant 0 : index
      %165 = vector.load %arg2[%c0_67, %c0_68, %c0_69] : memref<2x16x32xf32, #tpu.memory_space<vmem>>, vector<2x16x32xf32>
      %c0_70 = arith.constant 0 : index
      %c0_71 = arith.constant 0 : index
      %c0_72 = arith.constant 0 : index
      %166 = vector.load %arg3[%c0_70, %c0_71, %c0_72] : memref<1x16x32xf32, #tpu.memory_space<vmem>>, vector<1x16x32xf32>
      %167 = vector.broadcast %166 : vector<1x16x32xf32> to vector<2x16x32xf32>
      %168 = arith.addf %165, %167 : vector<2x16x32xf32>
      %169 = vector.shape_cast %168 : vector<2x16x32xf32> to vector<32x32xf32>
      %c0_73 = arith.constant 0 : index
      %c0_74 = arith.constant 0 : index
      %170 = vector.load %arg19[%c0_73, %c0_74] : memref<32x32xf32, #tpu.memory_space<vmem>>, vector<32x32xf32>
      tpu.vector_store %arg19[%c0_73, %c0_74], %169 {strides = array<i32>} : memref<32x32xf32, #tpu.memory_space<vmem>>, vector<32x32xf32>,
    } else {
    }
    %c0 = arith.constant 0 : index
    %c0_1 = arith.constant 0 : index
    %3 = vector.load %arg19[%c0, %c0_1] : memref<32x32xf32, #tpu.memory_space<vmem>>, vector<32x32xf32>
    %c0_2 = arith.constant 0 : index
    %c0_3 = arith.constant 0 : index
    %c0_4 = arith.constant 0 : index
    %4 = vector.load %arg4[%c0_2, %c0_3, %c0_4] : memref<1x1x32xf32, #tpu.memory_space<vmem>>, vector<1x1x32xf32>
    %5 = vector.shape_cast %4 : vector<1x1x32xf32> to vector<1x32xf32>
    %c0_5 = arith.constant 0 : index
    %c0_6 = arith.constant 0 : index
    %c0_7 = arith.constant 0 : index
    %6 = vector.load %arg5[%c0_5, %c0_6, %c0_7] : memref<1x1x32xf32, #tpu.memory_space<vmem>>, vector<1x1x32xf32>
    %7 = vector.shape_cast %6 : vector<1x1x32xf32> to vector<1x32xf32>
    %cst = arith.constant dense<0.000000e+00> : vector<32xf32>
    %8 = vector.multi_reduction <add>, %3, %cst [1] : vector<32x32xf32> to vector<32xf32>
    %9 = vector.shape_cast %8 : vector<32xf32> to vector<32x1xf32>
    %cst_8 = arith.constant 3.200000e+01 : f32
    %10 = vector.broadcast %cst_8 : f32 to vector<32x1xf32>
    %11 = arith.divf %9, %10 : vector<32x1xf32>
    %12 = vector.broadcast %11 : vector<32x1xf32> to vector<32x32xf32>
    %13 = arith.subf %3, %12 : vector<32x32xf32>
    %14 = arith.mulf %13, %13 : vector<32x32xf32>
    %cst_9 = arith.constant dense<0.000000e+00> : vector<32xf32>
    %15 = vector.multi_reduction <add>, %14, %cst_9 [1] : vector<32x32xf32> to vector<32xf32>
    %16 = vector.shape_cast %15 : vector<32xf32> to vector<32x1xf32>
    %cst_10 = arith.constant 3.200000e+01 : f32
    %17 = vector.broadcast %cst_10 : f32 to vector<32x1xf32>
    %18 = arith.divf %16, %17 : vector<32x1xf32>
    %19 = vector.broadcast %11 : vector<32x1xf32> to vector<32x32xf32>
    %20 = arith.subf %3, %19 : vector<32x32xf32>
    %cst_11 = arith.constant 9.99999974E-6 : f32
    %21 = vector.broadcast %cst_11 : f32 to vector<32x1xf32>
    %22 = arith.addf %18, %21 : vector<32x1xf32>
    %23 = math.rsqrt %22 : vector<32x1xf32>
    %24 = vector.broadcast %23 : vector<32x1xf32> to vector<32x32xf32>
    %25 = arith.mulf %20, %24 : vector<32x32xf32>
    %26 = vector.broadcast %5 : vector<1x32xf32> to vector<32x32xf32>
    %27 = arith.mulf %25, %26 : vector<32x32xf32>
    %28 = vector.broadcast %7 : vector<1x32xf32> to vector<32x32xf32>
    %29 = arith.addf %27, %28 : vector<32x32xf32>
    %30 = arith.truncf %29 : vector<32x32xf32> to vector<32x32xbf16>
    %c0_12 = arith.constant 0 : index
    %c0_13 = arith.constant 0 : index
    %c0_14 = arith.constant 0 : index
    %31 = vector.load %arg6[%c0_12, %c0_13, %c0_14] : memref<1x32x96xbf16, #tpu.memory_space<vmem>>, vector<1x32x96xbf16>
    %32 = vector.shape_cast %31 : vector<1x32x96xbf16> to vector<32x96xbf16>
    %cst_15 = arith.constant dense<0.000000e+00> : vector<32x96xf32>
    %33 = tpu.matmul %30, %32, %cst_15 {dimension_numbers = #tpu.dot_dimension_numbers<[1], [0], [0], [1], [0, 0, 1, 1], [], []>} : vector<32x32xbf16>, vector<32x96xbf16>, vector<32x96xf32> -> vector<32x96xf32>
    %34 = arith.truncf %33 : vector<32x96xf32> to vector<32x96xbf16>
    %35 = vector.shape_cast %34 : vector<32x96xbf16> to vector<2x16x96xbf16>
    %36 = vector.extract_strided_slice %35 {offsets = [0, 0, 0], sizes = [2, 16, 8], strides = [1, 1, 1]} : vector<2x16x96xbf16> to vector<2x16x8xbf16>
    %37 = vector.extract_strided_slice %35 {offsets = [0, 0, 32], sizes = [2, 16, 8], strides = [1, 1, 1]} : vector<2x16x96xbf16> to vector<2x16x8xbf16>
    %38 = vector.extract_strided_slice %35 {offsets = [0, 0, 64], sizes = [2, 16, 8], strides = [1, 1, 1]} : vector<2x16x96xbf16> to vector<2x16x8xbf16>
    %cst_16 = arith.constant dense<0.000000e+00> : vector<2x16x16xf32>
    %39 = tpu.matmul %36, %37, %cst_16 {dimension_numbers = #tpu.dot_dimension_numbers<[2], [2], [1], [1], [0, 0, 0, 1, 1, 1], [0], [0]>} : vector<2x16x8xbf16>, vector<2x16x8xbf16>, vector<2x16x16xf32> -> vector<2x16x16xf32>
    %cst_17 = arith.constant dense<0xFF800000> : vector<2x16xf32>
    %40 = vector.multi_reduction <maximumf>, %39, %cst_17 [2] : vector<2x16x16xf32> to vector<2x16xf32>
    %41 = vector.shape_cast %40 : vector<2x16xf32> to vector<2x16x1xf32>
    %42 = vector.broadcast %41 : vector<2x16x1xf32> to vector<2x16x16xf32>
    %43 = arith.subf %39, %42 : vector<2x16x16xf32>
    %44 = math.exp %43 : vector<2x16x16xf32>
    %cst_18 = arith.constant dense<0.000000e+00> : vector<2x16xf32>
    %45 = vector.multi_reduction <add>, %44, %cst_18 [2] : vector<2x16x16xf32> to vector<2x16xf32>
    %46 = vector.shape_cast %45 : vector<2x16xf32> to vector<2x16x1xf32>
    %47 = tpu.reciprocal %46 {approx = true} : vector<2x16x1xf32> -> vector<2x16x1xf32>
    %48 = vector.broadcast %47 : vector<2x16x1xf32> to vector<2x16x16xf32>
    %49 = arith.mulf %44, %48 : vector<2x16x16xf32>
    %50 = arith.truncf %49 : vector<2x16x16xf32> to vector<2x16x16xbf16>
    %cst_19 = arith.constant dense<0.000000e+00> : vector<2x16x8xf32>
    %51 = tpu.matmul %50, %38, %cst_19 {dimension_numbers = #tpu.dot_dimension_numbers<[2], [1], [1], [2], [0, 0, 0, 1, 1, 2], [0], [0]>} : vector<2x16x16xbf16>, vector<2x16x8xbf16>, vector<2x16x8xf32> -> vector<2x16x8xf32>
    %52 = arith.truncf %51 : vector<2x16x8xf32> to vector<2x16x8xbf16>
    %53 = vector.extract_strided_slice %35 {offsets = [0, 0, 8], sizes = [2, 16, 8], strides = [1, 1, 1]} : vector<2x16x96xbf16> to vector<2x16x8xbf16>
    %54 = vector.extract_strided_slice %35 {offsets = [0, 0, 40], sizes = [2, 16, 8], strides = [1, 1, 1]} : vector<2x16x96xbf16> to vector<2x16x8xbf16>
    %55 = vector.extract_strided_slice %35 {offsets = [0, 0, 72], sizes = [2, 16, 8], strides = [1, 1, 1]} : vector<2x16x96xbf16> to vector<2x16x8xbf16>
    %cst_20 = arith.constant dense<0.000000e+00> : vector<2x16x16xf32>
    %56 = tpu.matmul %53, %54, %cst_20 {dimension_numbers = #tpu.dot_dimension_numbers<[2], [2], [1], [1], [0, 0, 0, 1, 1, 1], [0], [0]>} : vector<2x16x8xbf16>, vector<2x16x8xbf16>, vector<2x16x16xf32> -> vector<2x16x16xf32>
    %cst_21 = arith.constant dense<0xFF800000> : vector<2x16xf32>
    %57 = vector.multi_reduction <maximumf>, %56, %cst_21 [2] : vector<2x16x16xf32> to vector<2x16xf32>
    %58 = vector.shape_cast %57 : vector<2x16xf32> to vector<2x16x1xf32>
    %59 = vector.broadcast %58 : vector<2x16x1xf32> to vector<2x16x16xf32>
    %60 = arith.subf %56, %59 : vector<2x16x16xf32>
    %61 = math.exp %60 : vector<2x16x16xf32>
    %cst_22 = arith.constant dense<0.000000e+00> : vector<2x16xf32>
    %62 = vector.multi_reduction <add>, %61, %cst_22 [2] : vector<2x16x16xf32> to vector<2x16xf32>
    %63 = vector.shape_cast %62 : vector<2x16xf32> to vector<2x16x1xf32>
    %64 = tpu.reciprocal %63 {approx = true} : vector<2x16x1xf32> -> vector<2x16x1xf32>
    %65 = vector.broadcast %64 : vector<2x16x1xf32> to vector<2x16x16xf32>
    %66 = arith.mulf %61, %65 : vector<2x16x16xf32>
    %67 = arith.truncf %66 : vector<2x16x16xf32> to vector<2x16x16xbf16>
    %cst_23 = arith.constant dense<0.000000e+00> : vector<2x16x8xf32>
    %68 = tpu.matmul %67, %55, %cst_23 {dimension_numbers = #tpu.dot_dimension_numbers<[2], [1], [1], [2], [0, 0, 0, 1, 1, 2], [0], [0]>} : vector<2x16x16xbf16>, vector<2x16x8xbf16>, vector<2x16x8xf32> -> vector<2x16x8xf32>
    %69 = arith.truncf %68 : vector<2x16x8xf32> to vector<2x16x8xbf16>
    %70 = vector.extract_strided_slice %35 {offsets = [0, 0, 16], sizes = [2, 16, 8], strides = [1, 1, 1]} : vector<2x16x96xbf16> to vector<2x16x8xbf16>
    %71 = vector.extract_strided_slice %35 {offsets = [0, 0, 48], sizes = [2, 16, 8], strides = [1, 1, 1]} : vector<2x16x96xbf16> to vector<2x16x8xbf16>
    %72 = vector.extract_strided_slice %35 {offsets = [0, 0, 80], sizes = [2, 16, 8], strides = [1, 1, 1]} : vector<2x16x96xbf16> to vector<2x16x8xbf16>
    %cst_24 = arith.constant dense<0.000000e+00> : vector<2x16x16xf32>
    %73 = tpu.matmul %70, %71, %cst_24 {dimension_numbers = #tpu.dot_dimension_numbers<[2], [2], [1], [1], [0, 0, 0, 1, 1, 1], [0], [0]>} : vector<2x16x8xbf16>, vector<2x16x8xbf16>, vector<2x16x16xf32> -> vector<2x16x16xf32>
    %cst_25 = arith.constant dense<0xFF800000> : vector<2x16xf32>
    %74 = vector.multi_reduction <maximumf>, %73, %cst_25 [2] : vector<2x16x16xf32> to vector<2x16xf32>
    %75 = vector.shape_cast %74 : vector<2x16xf32> to vector<2x16x1xf32>
    %76 = vector.broadcast %75 : vector<2x16x1xf32> to vector<2x16x16xf32>
    %77 = arith.subf %73, %76 : vector<2x16x16xf32>
    %78 = math.exp %77 : vector<2x16x16xf32>
    %cst_26 = arith.constant dense<0.000000e+00> : vector<2x16xf32>
    %79 = vector.multi_reduction <add>, %78, %cst_26 [2] : vector<2x16x16xf32> to vector<2x16xf32>
    %80 = vector.shape_cast %79 : vector<2x16xf32> to vector<2x16x1xf32>
    %81 = tpu.reciprocal %80 {approx = true} : vector<2x16x1xf32> -> vector<2x16x1xf32>
    %82 = vector.broadcast %81 : vector<2x16x1xf32> to vector<2x16x16xf32>
    %83 = arith.mulf %78, %82 : vector<2x16x16xf32>
    %84 = arith.truncf %83 : vector<2x16x16xf32> to vector<2x16x16xbf16>
    %cst_27 = arith.constant dense<0.000000e+00> : vector<2x16x8xf32>
    %85 = tpu.matmul %84, %72, %cst_27 {dimension_numbers = #tpu.dot_dimension_numbers<[2], [1], [1], [2], [0, 0, 0, 1, 1, 2], [0], [0]>} : vector<2x16x16xbf16>, vector<2x16x8xbf16>, vector<2x16x8xf32> -> vector<2x16x8xf32>
    %86 = arith.truncf %85 : vector<2x16x8xf32> to vector<2x16x8xbf16>
    %87 = vector.extract_strided_slice %35 {offsets = [0, 0, 24], sizes = [2, 16, 8], strides = [1, 1, 1]} : vector<2x16x96xbf16> to vector<2x16x8xbf16>
    %88 = vector.extract_strided_slice %35 {offsets = [0, 0, 56], sizes = [2, 16, 8], strides = [1, 1, 1]} : vector<2x16x96xbf16> to vector<2x16x8xbf16>
    %89 = vector.extract_strided_slice %35 {offsets = [0, 0, 88], sizes = [2, 16, 8], strides = [1, 1, 1]} : vector<2x16x96xbf16> to vector<2x16x8xbf16>
    %cst_28 = arith.constant dense<0.000000e+00> : vector<2x16x16xf32>
    %90 = tpu.matmul %87, %88, %cst_28 {dimension_numbers = #tpu.dot_dimension_numbers<[2], [2], [1], [1], [0, 0, 0, 1, 1, 1], [0], [0]>} : vector<2x16x8xbf16>, vector<2x16x8xbf16>, vector<2x16x16xf32> -> vector<2x16x16xf32>
    %cst_29 = arith.constant dense<0xFF800000> : vector<2x16xf32>
    %91 = vector.multi_reduction <maximumf>, %90, %cst_29 [2] : vector<2x16x16xf32> to vector<2x16xf32>
    %92 = vector.shape_cast %91 : vector<2x16xf32> to vector<2x16x1xf32>
    %93 = vector.broadcast %92 : vector<2x16x1xf32> to vector<2x16x16xf32>
    %94 = arith.subf %90, %93 : vector<2x16x16xf32>
    %95 = math.exp %94 : vector<2x16x16xf32>
    %cst_30 = arith.constant dense<0.000000e+00> : vector<2x16xf32>
    %96 = vector.multi_reduction <add>, %95, %cst_30 [2] : vector<2x16x16xf32> to vector<2x16xf32>
    %97 = vector.shape_cast %96 : vector<2x16xf32> to vector<2x16x1xf32>
    %98 = tpu.reciprocal %97 {approx = true} : vector<2x16x1xf32> -> vector<2x16x1xf32>
    %99 = vector.broadcast %98 : vector<2x16x1xf32> to vector<2x16x16xf32>
    %100 = arith.mulf %95, %99 : vector<2x16x16xf32>
    %101 = arith.truncf %100 : vector<2x16x16xf32> to vector<2x16x16xbf16>
    %cst_31 = arith.constant dense<0.000000e+00> : vector<2x16x8xf32>
    %102 = tpu.matmul %101, %89, %cst_31 {dimension_numbers = #tpu.dot_dimension_numbers<[2], [1], [1], [2], [0, 0, 0, 1, 1, 2], [0], [0]>} : vector<2x16x16xbf16>, vector<2x16x8xbf16>, vector<2x16x8xf32> -> vector<2x16x8xf32>
    %103 = arith.truncf %102 : vector<2x16x8xf32> to vector<2x16x8xbf16>
    %104 = tpu.concatenate %52, %69, %86, %103 in 2 : vector<2x16x8xbf16>, vector<2x16x8xbf16>, vector<2x16x8xbf16>, vector<2x16x8xbf16> -> vector<2x16x32xbf16>
    %105 = vector.shape_cast %104 : vector<2x16x32xbf16> to vector<32x32xbf16>
    %c0_32 = arith.constant 0 : index
    %c0_33 = arith.constant 0 : index
    %c0_34 = arith.constant 0 : index
    %106 = vector.load %arg7[%c0_32, %c0_33, %c0_34] : memref<1x32x32xbf16, #tpu.memory_space<vmem>>, vector<1x32x32xbf16>
    %107 = vector.shape_cast %106 : vector<1x32x32xbf16> to vector<32x32xbf16>
    %cst_35 = arith.constant dense<0.000000e+00> : vector<32x32xf32>
    %108 = tpu.matmul %105, %107, %cst_35 {dimension_numbers = #tpu.dot_dimension_numbers<[1], [0], [0], [1], [0, 0, 1, 1], [], []>} : vector<32x32xbf16>, vector<32x32xbf16>, vector<32x32xf32> -> vector<32x32xf32>
    %109 = arith.addf %3, %108 : vector<32x32xf32>
    %c0_36 = arith.constant 0 : index
    %c0_37 = arith.constant 0 : index
    %c0_38 = arith.constant 0 : index
    %110 = vector.load %arg8[%c0_36, %c0_37, %c0_38] : memref<1x1x32xf32, #tpu.memory_space<vmem>>, vector<1x1x32xf32>
    %111 = vector.shape_cast %110 : vector<1x1x32xf32> to vector<1x32xf32>
    %c0_39 = arith.constant 0 : index
    %c0_40 = arith.constant 0 : index
    %c0_41 = arith.constant 0 : index
    %112 = vector.load %arg9[%c0_39, %c0_40, %c0_41] : memref<1x1x32xf32, #tpu.memory_space<vmem>>, vector<1x1x32xf32>
    %113 = vector.shape_cast %112 : vector<1x1x32xf32> to vector<1x32xf32>
    %cst_42 = arith.constant dense<0.000000e+00> : vector<32xf32>
    %114 = vector.multi_reduction <add>, %109, %cst_42 [1] : vector<32x32xf32> to vector<32xf32>
    %115 = vector.shape_cast %114 : vector<32xf32> to vector<32x1xf32>
    %cst_43 = arith.constant 3.200000e+01 : f32
    %116 = vector.broadcast %cst_43 : f32 to vector<32x1xf32>
    %117 = arith.divf %115, %116 : vector<32x1xf32>
    %118 = vector.broadcast %117 : vector<32x1xf32> to vector<32x32xf32>
    %119 = arith.subf %109, %118 : vector<32x32xf32>
    %120 = arith.mulf %119, %119 : vector<32x32xf32>
    %cst_44 = arith.constant dense<0.000000e+00> : vector<32xf32>
    %121 = vector.multi_reduction <add>, %120, %cst_44 [1] : vector<32x32xf32> to vector<32xf32>
    %122 = vector.shape_cast %121 : vector<32xf32> to vector<32x1xf32>
    %cst_45 = arith.constant 3.200000e+01 : f32
    %123 = vector.broadcast %cst_45 : f32 to vector<32x1xf32>
    %124 = arith.divf %122, %123 : vector<32x1xf32>
    %125 = vector.broadcast %117 : vector<32x1xf32> to vector<32x32xf32>
    %126 = arith.subf %109, %125 : vector<32x32xf32>
    %cst_46 = arith.constant 9.99999974E-6 : f32
    %127 = vector.broadcast %cst_46 : f32 to vector<32x1xf32>
    %128 = arith.addf %124, %127 : vector<32x1xf32>
    %129 = math.rsqrt %128 : vector<32x1xf32>
    %130 = vector.broadcast %129 : vector<32x1xf32> to vector<32x32xf32>
    %131 = arith.mulf %126, %130 : vector<32x32xf32>
    %132 = vector.broadcast %111 : vector<1x32xf32> to vector<32x32xf32>
    %133 = arith.mulf %131, %132 : vector<32x32xf32>
    %134 = vector.broadcast %113 : vector<1x32xf32> to vector<32x32xf32>
    %135 = arith.addf %133, %134 : vector<32x32xf32>
    %136 = arith.truncf %135 : vector<32x32xf32> to vector<32x32xbf16>
    %c0_47 = arith.constant 0 : index
    %c0_48 = arith.constant 0 : index
    %c0_49 = arith.constant 0 : index
    %137 = vector.load %arg10[%c0_47, %c0_48, %c0_49] : memref<1x32x128xbf16, #tpu.memory_space<vmem>>, vector<1x32x128xbf16>
    %138 = vector.shape_cast %137 : vector<1x32x128xbf16> to vector<32x128xbf16>
    %cst_50 = arith.constant dense<0.000000e+00> : vector<32x128xf32>
    %139 = tpu.matmul %136, %138, %cst_50 {dimension_numbers = #tpu.dot_dimension_numbers<[1], [0], [0], [1], [0, 0, 1, 1], [], []>} : vector<32x32xbf16>, vector<32x128xbf16>, vector<32x128xf32> -> vector<32x128xf32>
    %c0_51 = arith.constant 0 : index
    %c0_52 = arith.constant 0 : index
    %c0_53 = arith.constant 0 : index
    %140 = vector.load %arg11[%c0_51, %c0_52, %c0_53] : memref<1x1x128xf32, #tpu.memory_space<vmem>>, vector<1x1x128xf32>
    %141 = vector.shape_cast %140 : vector<1x1x128xf32> to vector<1x128xf32>
    %142 = vector.broadcast %141 : vector<1x128xf32> to vector<32x128xf32>
    %143 = arith.addf %139, %142 : vector<32x128xf32>
    %cst_54 = arith.constant 5.000000e-01 : f32
    %144 = vector.broadcast %cst_54 : f32 to vector<32x128xf32>
    %145 = arith.mulf %144, %143 : vector<32x128xf32>
    %cst_55 = arith.constant 0.707106769 : f32
    %146 = vector.broadcast %cst_55 : f32 to vector<32x128xf32>
    %147 = arith.mulf %143, %146 : vector<32x128xf32>
    %148 = math.erf %147 : vector<32x128xf32>
    %cst_56 = arith.constant 1.000000e+00 : f32
    %149 = vector.broadcast %cst_56 : f32 to vector<32x128xf32>
    %150 = arith.addf %149, %148 : vector<32x128xf32>
    %151 = arith.mulf %145, %150 : vector<32x128xf32>
    %152 = arith.truncf %151 : vector<32x128xf32> to vector<32x128xbf16>
    %c0_57 = arith.constant 0 : index
    %c0_58 = arith.constant 0 : index
    %c0_59 = arith.constant 0 : index
    %153 = vector.load %arg12[%c0_57, %c0_58, %c0_59] : memref<1x128x32xbf16, #tpu.memory_space<vmem>>, vector<1x128x32xbf16>
    %154 = vector.shape_cast %153 : vector<1x128x32xbf16> to vector<128x32xbf16>
    %cst_60 = arith.constant dense<0.000000e+00> : vector<32x32xf32>
    %155 = tpu.matmul %152, %154, %cst_60 {dimension_numbers = #tpu.dot_dimension_numbers<[1], [0], [0], [1], [0, 0, 1, 1], [], []>} : vector<32x128xbf16>, vector<128x32xbf16>, vector<32x32xf32> -> vector<32x32xf32>
    %c0_61 = arith.constant 0 : index
    %c0_62 = arith.constant 0 : index
    %c0_63 = arith.constant 0 : index
    %156 = vector.load %arg13[%c0_61, %c0_62, %c0_63] : memref<1x1x32xf32, #tpu.memory_space<vmem>>, vector<1x1x32xf32>
    %157 = vector.shape_cast %156 : vector<1x1x32xf32> to vector<1x32xf32>
    %158 = vector.broadcast %157 : vector<1x32xf32> to vector<32x32xf32>
    %159 = arith.addf %155, %158 : vector<32x32xf32>
    %160 = arith.addf %109, %159 : vector<32x32xf32>
    %c0_64 = arith.constant 0 : index
    %c0_65 = arith.constant 0 : index
    %161 = vector.load %arg19[%c0_64, %c0_65] : memref<32x32xf32, #tpu.memory_space<vmem>>, vector<32x32xf32>
    tpu.vector_store %arg19[%c0_64, %c0_65], %160 {strides = array<i32>} : memref<32x32xf32, #tpu.memory_space<vmem>>, vector<32x32xf32>,
    %c1_i32 = arith.constant 1 : i32
    %162 = arith.cmpi eq, %arg1, %c1_i32 : i32
    %163 = arith.extui %162 : i1 to i32
    %c0_i32_66 = arith.constant 0 : i32
    %164 = arith.cmpi ne, %163, %c0_i32_66 : i32
    scf.if %164 {
      %c0_67 = arith.constant 0 : index
      %c0_68 = arith.constant 0 : index
      %165 = vector.load %arg14[%c0_67, %c0_68] : memref<1x32xf32, #tpu.memory_space<vmem>>, vector<1x32xf32>
      %c0_69 = arith.constant 0 : index
      %c0_70 = arith.constant 0 : index
      %166 = vector.load %arg15[%c0_69, %c0_70] : memref<1x32xf32, #tpu.memory_space<vmem>>, vector<1x32xf32>
      %cst_71 = arith.constant dense<0.000000e+00> : vector<32xf32>
      %167 = vector.multi_reduction <add>, %160, %cst_71 [1] : vector<32x32xf32> to vector<32xf32>
      %168 = vector.shape_cast %167 : vector<32xf32> to vector<32x1xf32>
      %cst_72 = arith.constant 3.200000e+01 : f32
      %169 = vector.broadcast %cst_72 : f32 to vector<32x1xf32>
      %170 = arith.divf %168, %169 : vector<32x1xf32>
      %171 = vector.broadcast %170 : vector<32x1xf32> to vector<32x32xf32>
      %172 = arith.subf %160, %171 : vector<32x32xf32>
      %173 = arith.mulf %172, %172 : vector<32x32xf32>
      %cst_73 = arith.constant dense<0.000000e+00> : vector<32xf32>
      %174 = vector.multi_reduction <add>, %173, %cst_73 [1] : vector<32x32xf32> to vector<32xf32>
      %175 = vector.shape_cast %174 : vector<32xf32> to vector<32x1xf32>
      %cst_74 = arith.constant 3.200000e+01 : f32
      %176 = vector.broadcast %cst_74 : f32 to vector<32x1xf32>
      %177 = arith.divf %175, %176 : vector<32x1xf32>
      %178 = vector.broadcast %170 : vector<32x1xf32> to vector<32x32xf32>
      %179 = arith.subf %160, %178 : vector<32x32xf32>
      %cst_75 = arith.constant 9.99999974E-6 : f32
      %180 = vector.broadcast %cst_75 : f32 to vector<32x1xf32>
      %181 = arith.addf %177, %180 : vector<32x1xf32>
      %182 = math.rsqrt %181 : vector<32x1xf32>
      %183 = vector.broadcast %182 : vector<32x1xf32> to vector<32x32xf32>
      %184 = arith.mulf %179, %183 : vector<32x32xf32>
      %185 = vector.broadcast %165 : vector<1x32xf32> to vector<32x32xf32>
      %186 = arith.mulf %184, %185 : vector<32x32xf32>
      %187 = vector.broadcast %166 : vector<1x32xf32> to vector<32x32xf32>
      %188 = arith.addf %186, %187 : vector<32x32xf32>
      %189 = arith.truncf %188 : vector<32x32xf32> to vector<32x32xbf16>
      %c0_76 = arith.constant 0 : index
      %c0_77 = arith.constant 0 : index
      %190 = vector.load %arg16[%c0_76, %c0_77] : memref<32x48xbf16, #tpu.memory_space<vmem>>, vector<32x48xbf16>
      %cst_78 = arith.constant dense<0.000000e+00> : vector<32x48xf32>
      %191 = tpu.matmul %189, %190, %cst_78 {dimension_numbers = #tpu.dot_dimension_numbers<[1], [0], [0], [1], [0, 0, 1, 1], [], []>} : vector<32x32xbf16>, vector<32x48xbf16>, vector<32x48xf32> -> vector<32x48xf32>
      %c0_79 = arith.constant 0 : index
      %c0_80 = arith.constant 0 : index
      %192 = vector.load %arg17[%c0_79, %c0_80] : memref<1x48xf32, #tpu.memory_space<vmem>>, vector<1x48xf32>
      %193 = vector.broadcast %192 : vector<1x48xf32> to vector<32x48xf32>
      %194 = arith.addf %191, %193 : vector<32x48xf32>
      %195 = vector.shape_cast %194 : vector<32x48xf32> to vector<2x16x48xf32>
      %c0_81 = arith.constant 0 : index
      %c0_82 = arith.constant 0 : index
      %c0_83 = arith.constant 0 : index
      %196 = vector.load %arg18[%c0_81, %c0_82, %c0_83] : memref<2x16x48xf32, #tpu.memory_space<vmem>>, vector<2x16x48xf32>
      tpu.vector_store %arg18[%c0_81, %c0_82, %c0_83], %195 {strides = array<i32>} : memref<2x16x48xf32, #tpu.memory_space<vmem>>, vector<2x16x48xf32>,
    } else {
    }
    return
  }
  func.func @transform_0(%arg0: i32, %arg1: i32) -> (i32, i32, i32) {
    %c0_i32 = arith.constant 0 : i32
    %c0_i32_0 = arith.constant 0 : i32
    %c0_i32_1 = arith.constant 0 : i32
    return %arg0, %c0_i32, %c0_i32_0 : i32, i32, i32
  }
  func.func @transform_1(%arg0: i32, %arg1: i32) -> (i32, i32, i32) {
    %c0_i32 = arith.constant 0 : i32
    %c0_i32_0 = arith.constant 0 : i32
    %c0_i32_1 = arith.constant 0 : i32
    %c0_i32_2 = arith.constant 0 : i32
    return %c0_i32, %c0_i32_0, %c0_i32_1 : i32, i32, i32
  }
  func.func @transform_2(%arg0: i32, %arg1: i32) -> (i32, i32, i32) {
    %c0_i32 = arith.constant 0 : i32
    %c0_i32_0 = arith.constant 0 : i32
    %c0_i32_1 = arith.constant 0 : i32
    return %arg1, %c0_i32, %c0_i32_0 : i32, i32, i32
  }
  func.func @transform_3(%arg0: i32, %arg1: i32) -> (i32, i32, i32) {
    %c0_i32 = arith.constant 0 : i32
    %c0_i32_0 = arith.constant 0 : i32
    %c0_i32_1 = arith.constant 0 : i32
    return %arg1, %c0_i32, %c0_i32_0 : i32, i32, i32
  }
  func.func @transform_4(%arg0: i32, %arg1: i32) -> (i32, i32, i32) {
    %c0_i32 = arith.constant 0 : i32
    %c0_i32_0 = arith.constant 0 : i32
    %c0_i32_1 = arith.constant 0 : i32
    return %arg1, %c0_i32, %c0_i32_0 : i32, i32, i32
  }
  func.func @transform_5(%arg0: i32, %arg1: i32) -> (i32, i32, i32) {
    %c0_i32 = arith.constant 0 : i32
    %c0_i32_0 = arith.constant 0 : i32
    %c0_i32_1 = arith.constant 0 : i32
    return %arg1, %c0_i32, %c0_i32_0 : i32, i32, i32
  }
  func.func @transform_6(%arg0: i32, %arg1: i32) -> (i32, i32, i32) {
    %c0_i32 = arith.constant 0 : i32
    %c0_i32_0 = arith.constant 0 : i32
    %c0_i32_1 = arith.constant 0 : i32
    return %arg1, %c0_i32, %c0_i32_0 : i32, i32, i32
  }
  func.func @transform_7(%arg0: i32, %arg1: i32) -> (i32, i32, i32) {
    %c0_i32 = arith.constant 0 : i32
    %c0_i32_0 = arith.constant 0 : i32
    %c0_i32_1 = arith.constant 0 : i32
    return %arg1, %c0_i32, %c0_i32_0 : i32, i32, i32
  }
  func.func @transform_8(%arg0: i32, %arg1: i32) -> (i32, i32, i32) {
    %c0_i32 = arith.constant 0 : i32
    %c0_i32_0 = arith.constant 0 : i32
    %c0_i32_1 = arith.constant 0 : i32
    return %arg1, %c0_i32, %c0_i32_0 : i32, i32, i32
  }
  func.func @transform_9(%arg0: i32, %arg1: i32) -> (i32, i32, i32) {
    %c0_i32 = arith.constant 0 : i32
    %c0_i32_0 = arith.constant 0 : i32
    %c0_i32_1 = arith.constant 0 : i32
    return %arg1, %c0_i32, %c0_i32_0 : i32, i32, i32
  }
  func.func @transform_10(%arg0: i32, %arg1: i32) -> (i32, i32, i32) {
    %c0_i32 = arith.constant 0 : i32
    %c0_i32_0 = arith.constant 0 : i32
    %c0_i32_1 = arith.constant 0 : i32
    return %arg1, %c0_i32, %c0_i32_0 : i32, i32, i32
  }
  func.func @transform_11(%arg0: i32, %arg1: i32) -> (i32, i32, i32) {
    %c0_i32 = arith.constant 0 : i32
    %c0_i32_0 = arith.constant 0 : i32
    %c0_i32_1 = arith.constant 0 : i32
    return %arg1, %c0_i32, %c0_i32_0 : i32, i32, i32
  }
  func.func @transform_12(%arg0: i32, %arg1: i32) -> (i32, i32) {
    %c0_i32 = arith.constant 0 : i32
    %c0_i32_0 = arith.constant 0 : i32
    %c0_i32_1 = arith.constant 0 : i32
    return %c0_i32, %c0_i32_0 : i32, i32
  }
  func.func @transform_13(%arg0: i32, %arg1: i32) -> (i32, i32) {
    %c0_i32 = arith.constant 0 : i32
    %c0_i32_0 = arith.constant 0 : i32
    %c0_i32_1 = arith.constant 0 : i32
    return %c0_i32, %c0_i32_0 : i32, i32
  }
  func.func @transform_14(%arg0: i32, %arg1: i32) -> (i32, i32) {
    %c0_i32 = arith.constant 0 : i32
    %c0_i32_0 = arith.constant 0 : i32
    %c0_i32_1 = arith.constant 0 : i32
    return %c0_i32, %c0_i32_0 : i32, i32
  }
  func.func @transform_15(%arg0: i32, %arg1: i32) -> (i32, i32) {
    %c0_i32 = arith.constant 0 : i32
    %c0_i32_0 = arith.constant 0 : i32
    %c0_i32_1 = arith.constant 0 : i32
    return %c0_i32, %c0_i32_0 : i32, i32
  }
  func.func @transform_16(%arg0: i32, %arg1: i32) -> (i32, i32, i32) {
    %c0_i32 = arith.constant 0 : i32
    %c0_i32_0 = arith.constant 0 : i32
    %c0_i32_1 = arith.constant 0 : i32
    return %arg0, %c0_i32, %c0_i32_0 : i32, i32, i32
  }
}

</mosaic_0001>

<bundles_post_ra>
// kernel: tpu_custom_call.1
= control target key start
LH: loop header
LB: loop body
LE: loop exit
PB: predicated region body
PF: predicated region fallthrough
CT: control target
= control target key end

     0   :  { %s3617_s0 = inlined_call_operand.vmem [shape: f32[2,16,32], index: 0, kind: input, shape index: {}]   ;;  %s3618_s1 = inlined_call_operand.vmem [shape: f32[1,16,32], index: 1, kind: input, shape index: {}]   ;;  %s3619_s2 = inlined_call_operand.hbm [shape: f32[2,1,32], index: 2, kind: input, shape index: {}]   ;;  %s3620_s3 = inlined_call_operand.hbm [shape: f32[2,1,32], index: 3, kind: input, shape index: {}]   ;;  %s3621_s4 = inlined_call_operand.vmem [shape: bf16[2,32,96], index: 4, kind: input, shape index: {}]   ;;  %s3622_s5 = inlined_call_operand.vmem [shape: bf16[2,32,32], index: 5, kind: input, shape index: {}]   ;;  %s3623_s6 = inlined_call_operand.vmem [shape: f32[2,1,32], index: 6, kind: input, shape index: {}]   ;;  %s3624_s7 = inlined_call_operand.vmem [shape: f32[2,1,32], index: 7, kind: input, shape index: {}]   ;;  %s3625_s8 = inlined_call_operand.vmem [shape: bf16[2,32,128], index: 8, kind: input, shape index: {}]   ;;  %s3626_s9 = inlined_call_operand.vmem [shape: f32[2,1,128], index: 9, kind: input, shape index: {}]   ;;  %s3627_s10 = inlined_call_operand.vmem [shape: bf16[2,128,32], index: 10, kind: input, shape index: {}]   ;;  %s3628_s11 = inlined_call_operand.vmem [shape: f32[2,1,32], index: 11, kind: input, shape index: {}]   ;;  %s3629_s12 = inlined_call_operand.vmem [shape: f32[1,32], index: 12, kind: input, shape index: {}]   ;;  %s3630_s13 = inlined_call_operand.vmem [shape: f32[1,32], index: 13, kind: input, shape index: {}]   ;;  %s3631_s14 = inlined_call_operand.vmem [shape: bf16[32,48], index: 14, kind: input, shape index: {}]   ;;  %s3632_s15 = inlined_call_operand.vmem [shape: f32[1,48], index: 15, kind: input, shape index: {}]   ;;  %s3633_s16 = inlined_call_operand.hbm [shape: f32[2,16,48], index: 16, kind: output, shape index: {}]  }
   0x1   :  { %3639 = sst [smem:[#allocation16_spill]] %s3617_s0 }
   0x2   :  { %3640 = sst [smem:[#allocation17_spill]] %s3619_s2 }
   0x3   :  { %3641 = sst [smem:[#allocation18_spill]] %s3620_s3 }
   0x4   :  { %3642 = sst [smem:[#allocation19_spill]] %s3621_s4 }
   0x5   :  { %3643 = sst [smem:[#allocation20_spill]] %s3622_s5 }
   0x6   :  { %3644 = sst [smem:[#allocation21_spill]] %s3629_s12 }
   0x7   :  { %3645 = sst [smem:[#allocation22_spill]] %s3630_s13 }
   0x8   :  { %3646 = sst [smem:[#allocation23_spill]] %s3632_s15 }
   0x9   :  { %3647 = sst [smem:[#allocation24_spill]] %s3633_s16 }
   0xa   :  { %21 = vsyncpa [#allocation4], 0 }
   0xb   :  { %23 = vsyncpa [#allocation4 + $0x1], 0 }
   0xc   :  { %24 = vsyncpa [#allocation7], 0 }
   0xd   :  { %26 = vsyncpa [#allocation7 + $0x1], 0 }
   0xe   :  { %27 = vsyncpa [#allocation5], 0  ;;  %s2989_s21 = smov 0   ;;  %s2991_s22 = smov 0  }
   0xf   :  { %s2993_s23 = smov 0   ;;  %s2995_s24 = smov 0  }
  0x10   :  { %s2997_s25 = smov 0   ;;  %s2999_s26 = smov 0  }
  0x11 LB: > { %3648 = sst [smem:[#allocation12_spill]] %s2873_s23  ;;  %s3635_s27 = sadd.s32 4294967295, %s2885_s26   ;;  %s2885_s26 = sphi %s2999_s26, %s33_s26   ;;  %s2881_s25 = sphi %s2997_s25, %s3670_s25   ;;  %s2877_s24 = sphi %s2995_s24, %s3669_s24   ;;  %s2873_s23 = sphi %s2993_s23, %s3668_s23   ;;  %s2869_s22 = sphi %s2991_s22, %s3672_s22   ;;  %s2865_s21 = sphi %s2989_s21, %s3671_s21  }
  0x12   : > { %3649 = sst [smem:[#allocation13_spill]] %s2881_s25  ;;  %s42_s28 = sadd.s32 1, %s2881_s25 }
  0x13   : > { %p43_p0 = scmp.ge.s32.totalorder %s42_s28, 2  ;;  %s99_s29 = sadd.s32 1, %s2873_s23 }
  0x14   : > { %p106_p1 = scmp.ne.s32.totalorder %s2873_s23, %s2869_s22  ;;  %p107_p2 = scmp.eq.s32.totalorder %s2885_s26, 0 }
  0x15   : > { %s3674_s28 = smov (%p43_p0, %s42_s28), 0  ;;  %p112_p4 = scmp.ne.s32.totalorder %s2869_s22, %s2865_s21 }
  0x16   : > { %3650 = sst [smem:[#allocation14_spill]] %s3674_s28  ;;  %p3025_p3 = por %p107_p2, %p106_p1 }
  0x17   : > { %s96_s0 = ssub.s32 %s2881_s25, %s3674_s28  ;;  %p113_p5 = scmp.eq.s32.totalorder %s3635_s27, 0 }
  0x18   : > { %p97_p6 = scmp.eq.s32.totalorder %s96_s0, 0  ;;  %p2560_p8 = scmp.lt.s32.totalorder %s2885_s26, 2 }
  0x19   : > { %p3034_p7 = por %p113_p5, %p112_p4  ;;  %s505_s19 = sand.u32 1, %s2873_s23  }
  0x1a   : > { %s3040_s18 = scalar_select %p97_p6, %s2873_s23, %s99_s29  }
  0x1b   : > { %s3654_s2 = sld [smem:[#allocation17_spill]]  ;;  %s508_s21 = scalar_lea.vmem [#allocation3], %s505_s19 }
  0x1c   : > { %3653 = sst [smem:[#allocation15_spill]] %s3040_s18  ;;  %s515_s12 = sshll.u32 %s508_s21, 4  ;;  %s516_s12 = int_to_ptr.vmem [resolvable:$true] %s515_s12 }
  0x1d   : > { %p2554_p9 = pnand %p2560_p8, %p3025_p3  ;;  %p2416_p10 = scmp.ge.s32.totalorder %s2885_s26, 1 }
  0x1e   : > { %p593_p11 = scmp.lt.s32.totalorder %s2885_s26, 3  ;;  %s506_s0 = scalar_lea.sflag [#allocation4], %s505_s19 }
  0x1f   : > { %s3655_s3 = sld [smem:[#allocation18_spill]]  ;;  %s525_s23 = scalar_lea.vmem [#allocation6], %s505_s19 }
  0x20   : > { %p594_p12 = pnand %p2416_p10, %p593_p11  ;;  %s532_s16 = sshll.u32 %s525_s23, 4  ;;  %s533_s16 = int_to_ptr.vmem [resolvable:$true] %s532_s16 }
  0x21   : > { %s511_s15 = scalar_lea.hbm %s3654_s2, %s2881_s25  ;;  %s3056_s30 = sand.u32 (!%p594_p12), 1, %s2869_s22  }
  0x22   : > { %s513_s13 = sshll.u32 %s511_s15, 4  ;;  %s523_s15 = scalar_lea.sflag [#allocation7], %s505_s19  ;;  %s514_s13 = int_to_ptr.hbm [resolvable:$true] %s513_s13 }
  0x23   : > { %2556 = dma.hbm_to_vmem [thread:$0]  (!%p2554_p9), %s514_s13, 16, %s516_s12, %s506_s0  }
  0x24   : > { %597 = sbr.rel (%p594_p12) target bundleno = 2543 (0x9ef), region = 84  ;;  %s600_s12 = scalar_lea.sflag (!%p594_p12), [#allocation4], %s3056_s30 }
  0x25   : > { %s528_s28 = scalar_lea.hbm %s3655_s3, %s2881_s25 }
  0x26   : > { %s530_s18 = sshll.u32 %s528_s28, 4  ;;  %s531_s18 = int_to_ptr.hbm [resolvable:$true] %s530_s18 }
  0x27   : > { %2559 = dma.hbm_to_vmem [thread:$0]  (!%p2554_p9), %s531_s18, 16, %s533_s16, %s523_s15  }
  0x29   : > { %2852 = dma.done.wait (%p3034_p7), %s600_s12, 16  }
  0x2a   : > { %2854 = vsyncadd (%p3034_p7), %s600_s12, 4294967280  ;;  %s609_s23 = scalar_lea.sflag [#allocation7], %s3056_s30 }
  0x2b   : > { %2856 = dma.done.wait (%p3034_p7), %s609_s23, 16  }
  0x2c   : > { %2858 = vsyncadd (%p3034_p7), %s609_s23, 4294967280  ;;  %p704_p13 = scmp.lt.s32.totalorder %s2877_s24, 1  ;;  %s3656_s4 = sld [smem:[#allocation19_spill]] }
  0x2d   : > { %s3657_s5 = sld [smem:[#allocation20_spill]]  ;;  %p2425_p0 = scmp.ne.s32.totalorder %s2877_s24, 0 }
  0x2e   : > { %s3072_s28 = scalar_select %p704_p13, %s2877_s24, 1 }
  0x30   : > { %s2523_s18 = sshll.u32 %s3072_s28, 4  ;;  %s719_s13 = scalar_lea.vmem %s3624_s7, %s3072_s28 }
  0x31   : > { %s3096_s25 = scalar_lea.vmem %s3625_s8, %s2523_s18  ;;  %s727_s0 = scalar_lea.vmem %s3626_s9, %s3072_s28 }
  0x32   : > { %s3082_s17 = scalar_lea.vmem %s3656_s4, %s2523_s18  ;;  %s2526_s29 = sshll.u32 %s3072_s28, 6 }
  0x33   : > { %s3087_s12 = scalar_lea.vmem %s3657_s5, %s2523_s18  ;;  %s3106_s16 = scalar_lea.vmem %s3627_s10, %s2526_s29 }
  0x34   : > { %s735_s27 = scalar_lea.vmem %s3628_s11, %s3072_s28  ;;  %741 = sbr.rel (%p2425_p0) target bundleno = 66 (0x42), region = 96 }
  0x35   : > { %s3658_s18 = sld [smem:[#allocation16_spill]] (!%p2425_p0) }
  0x39   : > { %v746_v1 = vld [vmem:[%s3618_s1] sm:$0xff]  ;;  %vm752_vm0 = vcmask 261120   ;;  %v747_v4 = vld [vmem:[%s3618_s1 + $0x8] sm:$0xff] }
  0x3b   : > { %v742_v0 = vld [vmem:[%s3658_s18] sm:$0xff]  ;;  %v743_v2 = vld [vmem:[%s3658_s18 + $0x8] sm:$0xff]  ;;  %v744_v5 = vld [vmem:[%s3658_s18 + $0x10] sm:$0xff] }
  0x3c   : > { %v748_v3 = vadd.f32 %v746_v1, %v742_v0  ;;  %v745_v6 = vld [vmem:[%s3658_s18 + $0x18] sm:$0xff]  ;;  %v749_v7 = vadd.f32 %v747_v4, %v743_v2  ;;  %v750_v8 = vadd.f32 %v746_v1, %v744_v5 }
  0x3d   : > { %v751_v9 = vadd.f32 %v747_v4, %v745_v6 }
  0x3e   : > { %753 = vst.msk [vmem:[#allocation2] sm:$0xff] %vm752_vm0, %v748_v3 }
  0x3f   : > { %754 = vst.msk [vmem:[#allocation2 + $0x8] sm:$0xff] %vm752_vm0, %v749_v7 }
  0x40   : > { %755 = vst.msk [vmem:[#allocation2 + $0x10] sm:$0xff] %vm752_vm0, %v750_v8 }
  0x41   : > { %756 = vst.msk [vmem:[#allocation2 + $0x18] sm:$0xff] %vm752_vm0, %v751_v9 }
  0x42 PF: > { %vm763_vm1 = vcmask 261120   ;;  %v2887_v18 = vmov 32.0   ;;  %v2528_v45 = vld [vmem:[%s3082_s17 + $0x8] sm:$0xff]  ;;  %v2527_v49 = vld [vmem:[%s3082_s17] sm:$0xff]  ;;  %s3659_s17 = scalar_lea.vmem [#allocation3], %s3056_s30  ;;  %s3660_s23 = scalar_lea.vmem [#allocation6], %s3056_s30 }
  0x43   : > { %2634 = vrcp.f32 %v2887_v18  ;;  %903 = vmatpush.bf16.msra.mxu0 %v2528_v45  ;;  %s2888_s30 = smov 88   ;;  %s2889_s19 = smov 96   ;;  %vm927_vm15 = vcmask 64512   ;;  %vm975_vm0 = vcmask 130048  }
  0x44   : > { %s2890_s20 = smov 120   ;;  %s2891_s4 = smov 72  }
  0x45   : > { %v757_v11 = vld [vmem:[#allocation2] sm:$0xff]  ;;  %s2892_s21 = smov 112   ;;  %s2893_s5 = smov 80  }
  0x46   : > { %v764_v13 = vsel %vm763_vm1, %v757_v11, 0.0  ;;  %v758_v15 = vld [vmem:[#allocation2 + $0x8] sm:$0xff]  ;;  %s2894_s29 = smov 56   ;;  %s2895_s15 = smov 104  }
  0x47   : > { %v759_v10 = vld [vmem:[#allocation2 + $0x10] sm:$0xff]  ;;  %765 = vadd.xlane.f32.xlu0 %v764_v13  ;;  %v767_v17 = vsel %vm763_vm1, %v758_v15, 0.0  ;;  %904 = vmatpush.bf16.msra.mxu0 %v2527_v49  ;;  %s2896_s2 = smov 64   ;;  %s2897_s3 = smov 48  }
  0x48   : > { %v770_v12 = vsel %vm763_vm1, %v759_v10, 0.0  ;;  %v760_v14 = vld [vmem:[#allocation2 + $0x18] sm:$0xff]  ;;  %p2508_p1 = scmp.ne.s32.totalorder %s2877_s24, 1 }
  0x49   : > { %771 = vadd.xlane.f32.xlu1 %v770_v12  ;;  %v773_v16 = vsel %vm763_vm1, %v760_v14, 0.0  ;;  %v2635_v19 = vpop.eup %2634 }
  0x4a   : > { %v777_v20 = vmul.f32 32.0, %v2635_v19  ;;  %vm781_vm2 = vweird.f32 %v2635_v19 }
  0x4c   : > { %v778_v21 = vsub.f32 1.0, %v777_v20 }
  0x4e   : > { %v779_v22 = vmul.f32 %v2635_v19, %v778_v21 }
  0x4f   : > { %768 = vadd.xlane.f32.xlu0 %v767_v17 }
  0x50   : > { %v780_v23 = vadd.f32 %v2635_v19, %v779_v22  ;;  %v2629_v22 = vld [vmem:[%s3660_s23] ss:$0 sm:$0xff]  ;;  %s2899_s23 = smov 8  }
  0x51   : > { %774 = vadd.xlane.f32.xlu1 %v773_v16 }
  0x52   : > { %v3135_v24 = vsel %vm781_vm2, %v2635_v19, %v780_v23  ;;  %vm1590_vm2 = vcmask 195584  }
  0xba   : > { %v766_v26 = vpop.xlane.xlu0 %765 }
  0xbb   : > { %v783_v28 = vmul.f32 %v3135_v24, %v766_v26 }
  0xbc   : > { %v772_v25 = vpop.xlane.xlu1 %771 }
  0xbd   : > { %v785_v27 = vmul.f32 %v3135_v24, %v772_v25  ;;  %v787_v30 = vsub.f32 %v757_v11, %v783_v28 }
  0xbf   : > { %v3139_v29 = vsub.f32 %v759_v10, %v785_v27  ;;  %v791_v32 = vmul.f32 %v787_v30, %v787_v30 }
  0xc1   : > { %v793_v31 = vmul.f32 %v3139_v29, %v3139_v29  ;;  %v795_v34 = vsel %vm763_vm1, %v791_v32, 0.0 }
  0xc2   : > { %796 = vadd.xlane.f32.xlu2 %v795_v34  ;;  %v769_v36 = vpop.xlane.xlu0 %768 }
  0xc3   : > { %v801_v33 = vsel %vm763_vm1, %v793_v31, 0.0  ;;  %v784_v38 = vmul.f32 %v3135_v24, %v769_v36 }
  0xc4   : > { %v775_v35 = vpop.xlane.xlu1 %774  ;;  %802 = vadd.xlane.f32.xlu0 %v801_v33 }
  0xc5   : > { %v786_v37 = vmul.f32 %v3135_v24, %v775_v35  ;;  %v788_v40 = vsub.f32 %v758_v15, %v784_v38  ;;  %v2628_v15 = vld [vmem:[%s3659_s17] ss:$0 sm:$0xff]  ;;  %s2898_s17 = smov 40  }
  0xc7   : > { %v3147_v39 = vsub.f32 %v760_v14, %v786_v37  ;;  %v792_v42 = vmul.f32 %v788_v40, %v788_v40 }
  0xc9   : > { %v794_v41 = vmul.f32 %v3147_v39, %v3147_v39  ;;  %v798_v44 = vsel %vm763_vm1, %v792_v42, 0.0 }
  0xca   : > { %799 = vadd.xlane.f32.xlu2 %v798_v44 }
  0xcb   : > { %v804_v43 = vsel %vm763_vm1, %v794_v41, 0.0 }
  0xcc   : > { %805 = vadd.xlane.f32.xlu1 %v804_v43 }
 0x135   : > { %v797_v46 = vpop.xlane.xlu2 %796 }
 0x136   : > { %v807_v47 = vmul.f32 %v797_v46, %v3135_v24 }
 0x137   : > { %v803_v48 = vpop.xlane.xlu0 %802 }
 0x138   : > { %v811_v50 = vadd.f32 1e-05, %v807_v47  ;;  %v809_v51 = vmul.f32 %v803_v48, %v3135_v24 }
 0x13a   : > { %2636 = vrsqrt.f32 %v811_v50  ;;  %v813_v52 = vadd.f32 1e-05, %v809_v51  ;;  %vm821_vm4 = vweird.f32 %v811_v50 }
 0x13c   : > { %2638 = vrsqrt.f32 %v813_v52  ;;  %vm841_vm11 = vweird.f32 %v813_v52 }
 0x13d   : > { %v800_v54 = vpop.xlane.xlu2 %799 }
 0x13e   : > { %v808_v56 = vmul.f32 %v800_v54, %v3135_v24 }
 0x13f   : > { %v806_v53 = vpop.xlane.xlu1 %805 }
 0x140   : > { %v810_v55 = vmul.f32 %v806_v53, %v3135_v24  ;;  %v2637_v57 = vpop.eup %2636  ;;  %v812_v59 = vadd.f32 1e-05, %v808_v56 }
 0x141   : > { %v816_v60 = vmul.f32 %v2637_v57, %v811_v50  ;;  %vm822_vm3 = vweird.f32 %v2637_v57 }
 0x142   : > { %v814_v58 = vadd.f32 1e-05, %v810_v55  ;;  %v2639_v63 = vpop.eup %2638  ;;  %vm823_vm5 = vmor %vm821_vm4, %vm822_vm3  ;;  %vm831_vm7 = vweird.f32 %v812_v59 }
 0x143   : > { %v817_v61 = vmul.f32 %v2637_v57, %v816_v60  ;;  %v836_v5 = vmul.f32 %v2639_v63, %v813_v52  ;;  %vm842_vm12 = vweird.f32 %v2639_v63 }
 0x144   : > { %2640 = vrsqrt.f32 %v814_v58  ;;  %vm851_vm9 = vweird.f32 %v814_v58  ;;  %vm843_vm14 = vmor %vm841_vm11, %vm842_vm12 }
 0x145   : > { %2642 = vrsqrt.f32 %v812_v59  ;;  %v818_v62 = vmul.f32 0.5, %v817_v61  ;;  %v837_v10 = vmul.f32 %v2639_v63, %v836_v5 }
 0x147   : > { %v819_v0 = vsub.f32 1.5, %v818_v62  ;;  %v838_v16 = vmul.f32 0.5, %v837_v10 }
 0x149   : > { %v820_v4 = vmul.f32 %v2637_v57, %v819_v0  ;;  %v839_v23 = vsub.f32 1.5, %v838_v16 }
 0x14a   : > { %v2641_v1 = vpop.eup %2640 }
 0x14b   : > { %v2643_v2 = vpop.eup %2642  ;;  %v846_v3 = vmul.f32 %v2641_v1, %v814_v58  ;;  %v824_v9 = vsel %vm823_vm5, %v2637_v57, %v820_v4  ;;  %vm852_vm10 = vweird.f32 %v2641_v1 }
 0x14c   : > { %v826_v6 = vmul.f32 %v2643_v2, %v812_v59  ;;  %vm832_vm6 = vweird.f32 %v2643_v2  ;;  %v855_v14 = vmul.f32 %v824_v9, %v787_v30  ;;  %vm853_vm13 = vmor %vm851_vm9, %vm852_vm10  ;;  %v840_v30 = vmul.f32 %v2639_v63, %v839_v23 }
 0x14d   : > { %v847_v7 = vmul.f32 %v2641_v1, %v846_v3  ;;  %vm833_vm8 = vmor %vm831_vm7, %vm832_vm6 }
 0x14e   : > { %v827_v8 = vmul.f32 %v2643_v2, %v826_v6  ;;  %v862_v21 = vmul.f32 %v2628_v15, %v855_v14  ;;  %v844_v33 = vsel %vm843_vm14, %v2639_v63, %v840_v30 }
 0x14f   : > { %v848_v12 = vmul.f32 0.5, %v847_v7  ;;  %v857_v35 = vmul.f32 %v844_v33, %v3139_v29 }
 0x150   : > { %v828_v11 = vmul.f32 0.5, %v827_v8  ;;  %v869_v27 = vadd.f32 %v2629_v22, %v862_v21 }
 0x151   : > { %v849_v18 = vsub.f32 1.5, %v848_v12  ;;  %v864_v37 = vmul.f32 %v2628_v15, %v857_v35 }
 0x152   : > { %v829_v13 = vsub.f32 1.5, %v828_v11 }
 0x153   : > { %v850_v26 = vmul.f32 %v2641_v1, %v849_v18 }
 0x154   : > { %v830_v17 = vmul.f32 %v2643_v2, %v829_v13 }
 0x155   : > { %v854_v32 = vsel %vm853_vm13, %v2641_v1, %v850_v26 }
 0x156   : > { %v834_v19 = vsel %vm833_vm8, %v2643_v2, %v830_v17  ;;  %v858_v34 = vmul.f32 %v854_v32, %v3147_v39 }
 0x157   : > { %v856_v20 = vmul.f32 %v834_v19, %v788_v40  ;;  %v871_v40 = vadd.f32 %v2629_v22, %v864_v37 }
 0x158   : > { %v865_v36 = vmul.f32 %v2628_v15, %v858_v34 }
 0x159   : > { %v863_v25 = vmul.f32 %v2628_v15, %v856_v20 }
 0x15a   : > { %v872_v38 = vadd.f32 %v2629_v22, %v865_v36 }
 0x15b   : > { %v870_v28 = vadd.f32 %v2629_v22, %v863_v25 }
 0x15c   : > { %v874_v41 = vpack.c.bf16 %v872_v38, %v871_v40 }
 0x15d   : > { %v873_v31 = vpack.c.bf16 %v870_v28, %v869_v27 }
 0x15f   : > { %2434 = vmatmul.msk.bf16.vlgmr.msra.gmra.mxu0 %vm763_vm1, %v873_v31 }
 0x16f   : > { %2435 = vmatmul.msk.bf16.gmra.mxu0 %vm763_vm1, %v874_v41 }
 0x1dc   : > { %v906_v42 = vpop.f32.mrf.mxu0 }
 0x1dd   : > { %v916_v43 = vpack.c.bf16 %v906_v42, %v906_v42 }
 0x1df   : > { %v922_v46 = vunpack.c.l.b16 %v916_v43 }
 0x1e4   : > { %v908_v44 = vpop.f32.mrf.mxu0 }
 0x1e5   : > { %v917_v45 = vpack.c.bf16 %v908_v44, %v908_v44 }
 0x1e7   : > { %v923_v47 = vunpack.c.l.b16 %v917_v45 }
 0x1e9   : > { %v3167_v48 = vpack.c.b16 %v923_v47, %v922_v46 }
 0x1eb   : > { %1080 = vrot.lane.b32.xlu1 %v3167_v48, %s2888_s30  ;;  %925 = vrot.lane.b32.xlu0 %v3167_v48, %s2889_s19 }
 0x1ec   : > { %v911_v29 = vpop.f32.mrf.mxu0 }
 0x1ed   : > { %v918_v39 = vpack.c.bf16 %v911_v29, %v911_v29 }
 0x1ef   : > { %v950_v51 = vunpack.c.l.b16 %v918_v39 }
 0x1f4   : > { %v913_v49 = vpop.f32.mrf.mxu0 }
 0x1f5   : > { %v919_v50 = vpack.c.bf16 %v913_v49, %v913_v49 }
 0x1f7   : > { %v951_v52 = vunpack.c.l.b16 %v919_v50 }
 0x1f9   : > { %v3171_v53 = vpack.c.b16 %v951_v52, %v950_v51 }
 0x1fb   : > { %1102 = vrot.lane.b32.xlu1 %v3171_v53, %s2890_s20  ;;  %1104 = vrot.lane.b32.xlu0 %v3171_v53, %s2888_s30  ;;  %s2900_s30 = smov 16  }
 0x1fc   : > { %953 = vrot.lane.b32.xlu2 %v3171_v53, %s2889_s19  ;;  %s2901_s19 = smov 24  }
 0x203   : > { %1380 = vrot.lane.b32.xlu1 %v3167_v48, %s2891_s4  ;;  %1228 = vrot.lane.b32.xlu0 %v3167_v48, %s2892_s21 }
 0x204   : > { %1078 = vrot.lane.b32.xlu2 %v3167_v48, %s2890_s20  ;;  %s3661_s20 = scalar_lea.vmem %s3623_s6, %s3072_s28 }
 0x20b   : > { %1404 = vrot.lane.b32.xlu1 %v3171_v53, %s2891_s4  ;;  %1252 = vrot.lane.b32.xlu0 %v3171_v53, %s2892_s21 }
 0x20c   : > { %1230 = vrot.lane.b32.xlu2 %v3167_v48, %s2893_s5 }
 0x213   : > { %1179 = vrot.lane.b32.xlu1 %v3167_v48, %s2894_s29  ;;  %1402 = vrot.lane.b32.xlu0 %v3171_v53, %s2895_s15 }
 0x214   : > { %1254 = vrot.lane.b32.xlu2 %v3171_v53, %s2893_s5 }
 0x21b   : > { %1029 = vrot.lane.b32.xlu1 %v3167_v48, %s2896_s2 }
 0x21c   : > { %1378 = vrot.lane.b32.xlu2 %v3167_v48, %s2895_s15 }
 0x223   : > { %1054 = vrot.lane.b32.xlu1 %v3171_v53, %s2896_s2 }
 0x256   : > { %v954_v54 = vpop.permute.xlu2 %953 }
 0x257   : > { %v959_v55 = vsel %vm927_vm15, %v954_v54, 0 }
 0x258   : > { %968 = vmatpush.bf16.xpose.msra.mxu2 %v959_v55 }
 0x25d   : > { %v1081_v56 = vpop.permute.xlu1 %1080  ;;  %v926_v57 = vpop.permute.xlu0 %925 }
 0x25e   : > { %v1079_v58 = vpop.permute.xlu2 %1078  ;;  %v932_v59 = vsel %vm927_vm15, %v926_v57, 0  ;;  %v1086_v60 = vsel %vm927_vm15, %v1081_v56, 0 }
 0x25f   : > { %2437 = vmatmul.msk.bf16.vlgmr.msra.gmra.mxu2 %vm927_vm15, %v3171_v53  ;;  %941 = vmatpush.bf16.xpose.msra.mxu1 %v932_v59 }
 0x266   : > { %v1231_v61 = vpop.permute.xlu2 %1230  ;;  %2436 = vmatmul.msk.bf16.vlgmr.msra.gmra.mxu1 %vm927_vm15, %v3167_v48 }
 0x267   : > { %1095 = vmatpush.bf16.xpose.msrb.mxu1 %v1086_v60  ;;  %v1236_v62 = vsel %vm927_vm15, %v1231_v61, 0 }
 0x26d   : > { %v1103_v63 = vpop.permute.xlu1 %1102  ;;  %v1105_v0 = vpop.permute.xlu0 %1104 }
 0x26e   : > { %v1255_v1 = vpop.permute.xlu2 %1254  ;;  %v1110_v2 = vsel %vm927_vm15, %v1105_v0, 0 }
 0x26f   : > { %1245 = vmatpush.bf16.xpose.msra.mxu1 %v1236_v62  ;;  %v1260_v3 = vsel %vm927_vm15, %v1255_v1, 0  ;;  %1119 = vmatpush.bf16.xpose.msrb.mxu2 %v1110_v2 }
 0x275   : > { %v1381_v4 = vpop.permute.xlu1 %1380  ;;  %v1229_v6 = vpop.permute.xlu0 %1228 }
 0x276   : > { %v1386_v5 = vsel %vm927_vm15, %v1381_v4, 0  ;;  %2440 = vmatmul.msk.bf16.vlgmr.msrb.gmra.mxu1 %vm927_vm15, %v1079_v58  ;;  %2441 = vmatmul.msk.bf16.vlgmr.msrb.gmra.mxu2 %vm927_vm15, %v1103_v63  ;;  %v1379_v12 = vpop.permute.xlu2 %1378 }
 0x277   : > { %1269 = vmatpush.bf16.xpose.msra.mxu2 %v1260_v3  ;;  %1395 = vmatpush.bf16.xpose.msrb.mxu1 %v1386_v5 }
 0x27d   : > { %v1405_v7 = vpop.permute.xlu1 %1404  ;;  %v1253_v9 = vpop.permute.xlu0 %1252 }
 0x27e   : > { %v1410_v8 = vsel %vm927_vm15, %v1405_v7, 0 }
 0x27f   : > { %1419 = vmatpush.bf16.xpose.msrb.mxu2 %v1410_v8 }
 0x285   : > { %v1180_v10 = vpop.permute.xlu1 %1179  ;;  %v1403_v14 = vpop.permute.xlu0 %1402 }
 0x286   : > { %2444 = vmatmul.msk.bf16.vlgmr.msra.gmra.mxu1 %vm927_vm15, %v1229_v6  ;;  %2445 = vmatmul.msk.bf16.vlgmr.msra.gmra.mxu2 %vm927_vm15, %v1253_v9 }
 0x28d   : > { %v1030_v11 = vpop.permute.xlu1 %1029 }
 0x28e   : > { %1042 = vmatpush.bf16.msrb.mxu0 %v1030_v11 }
 0x295   : > { %v1055_v13 = vpop.permute.xlu1 %1054 }
 0x296   : > { %1067 = vmatpush.bf16.msra.mxu3 %v1055_v13  ;;  %2448 = vmatmul.msk.bf16.vlgmr.msrb.gmra.mxu1 %vm927_vm15, %v1379_v12 }
 0x297   : > { %2449 = vmatmul.msk.bf16.vlgmr.msrb.gmra.mxu2 %vm927_vm15, %v1403_v14 }
 0x29a   : > { %1192 = vmatpush.bf16.msrb.mxu3 %v1180_v10 }
 0x2e2   : > { %v3207_v15 = vpop.f32.mrf.mxu2 }
 0x2e3   : > { %v982_v16 = vsel %vm975_vm0, %v3207_v15, -inf  ;;  %v943_v17 = vpop.f32.mrf.mxu1 }
 0x2e4   : > { %983 = vmax.xlane.f32.xlu2 %v982_v16  ;;  %v976_v18 = vsel %vm975_vm0, %v943_v17, -inf }
 0x2e5   : > { %977 = vmax.xlane.f32.xlu1 %v976_v18 }
 0x2ea   : > { %v972_v19 = vpop.f32.mrf.mxu2 }
 0x2eb   : > { %v945_v20 = vpop.f32.mrf.mxu1  ;;  %v985_v21 = vsel %vm975_vm0, %v972_v19, -inf }
 0x2ec   : > { %v979_v22 = vsel %vm975_vm0, %v945_v20, -inf }
 0x2ed   : > { %986 = vmax.xlane.f32.xlu1 %v985_v21  ;;  %980 = vmax.xlane.f32.xlu0 %v979_v22 }
 0x2f3   : > { %v1097_v23 = vpop.f32.mrf.mxu1 }
 0x2f4   : > { %v1126_v25 = vsel %vm975_vm0, %v1097_v23, -inf }
 0x2f5   : > { %1127 = vmax.xlane.f32.xlu0 %v1126_v25 }
 0x2f9   : > { %v3215_v26 = vpop.f32.mrf.mxu2 }
 0x2fa   : > { %v1132_v30 = vsel %vm975_vm0, %v3215_v26, -inf }
 0x2fb   : > { %v3217_v27 = vpop.f32.mrf.mxu1 }
 0x2fc   : > { %v1129_v28 = vsel %vm975_vm0, %v3217_v27, -inf }
 0x2fd   : > { %1130 = vmax.xlane.f32.xlu2 %v1129_v28  ;;  %1133 = vmax.xlane.f32.xlu0 %v1132_v30 }
 0x301   : > { %v3223_v31 = vpop.f32.mrf.mxu2 }
 0x302   : > { %v1135_v37 = vsel %vm975_vm0, %v3223_v31, -inf }
 0x303   : > { %v3225_v32 = vpop.f32.mrf.mxu1 }
 0x304   : > { %v1276_v33 = vsel %vm975_vm0, %v3225_v32, -inf }
 0x305   : > { %1277 = vmax.xlane.f32.xlu2 %v1276_v33 }
 0x306   : > { %1329 = vrot.lane.b32.xlu1 %v3167_v48, %s2897_s3 }
 0x309   : > { %v3231_v34 = vpop.f32.mrf.mxu2 }
 0x30a   : > { %v1282_v35 = vsel %vm975_vm0, %v3231_v34, -inf }
 0x30b   : > { %v3235_v36 = vpop.f32.mrf.mxu1  ;;  %1283 = vmax.xlane.f32.xlu0 %v1282_v35 }
 0x30c   : > { %v1279_v29 = vsel %vm975_vm0, %v3235_v36, -inf }
 0x30d   : > { %1136 = vmax.xlane.f32.xlu2 %v1135_v37 }
 0x311   : > { %v3239_v38 = vpop.f32.mrf.mxu2 }
 0x312   : > { %v1285_v41 = vsel %vm975_vm0, %v3239_v38, -inf }
 0x313   : > { %v3241_v40 = vpop.f32.mrf.mxu1 }
 0x314   : > { %v1426_v39 = vsel %vm975_vm0, %v3241_v40, -inf }
 0x315   : > { %1286 = vmax.xlane.f32.xlu2 %v1285_v41 }
 0x31a   : > { %v3245_v42 = vpop.f32.mrf.mxu2 }
 0x31b   : > { %v3247_v43 = vpop.f32.mrf.mxu1  ;;  %v1432_v47 = vsel %vm975_vm0, %v3245_v42, -inf }
 0x31c   : > { %v1429_v44 = vsel %vm975_vm0, %v3247_v43, -inf }
 0x31d   : > { %1430 = vmax.xlane.f32.xlu0 %v1429_v44 }
 0x322   : > { %v3251_v45 = vpop.f32.mrf.mxu2 }
 0x323   : > { %v1435_v46 = vsel %vm975_vm0, %v3251_v45, -inf }
 0x324   : > { %1436 = vmax.xlane.f32.xlu2 %v1435_v46 }
 0x325   : > { %1433 = vmax.xlane.f32.xlu0 %v1432_v47 }
 0x330   : > { %1280 = vmax.xlane.f32.xlu1 %v1279_v29 }
 0x338   : > { %1427 = vmax.xlane.f32.xlu1 %v1426_v39 }
 0x357   : > { %v984_v55 = vpop.xlane.xlu2 %983 }
 0x358   : > { %v978_v49 = vpop.xlane.xlu1 %977  ;;  %v990_v61 = vsub.f32 %v3207_v15, %v984_v55 }
 0x359   : > { %v988_v50 = vsub.f32 %v943_v17, %v978_v49 }
 0x35a   : > { %v996_v63 = vmul.f32 1.442695, %v990_v61 }
 0x35b   : > { %v992_v51 = vmul.f32 1.442695, %v988_v50 }
 0x35d   : > { %2644 = vpow2.f32 %v992_v51 }
 0x360   : > { %v987_v52 = vpop.xlane.xlu1 %986  ;;  %v981_v54 = vpop.xlane.xlu0 %980 }
 0x361   : > { %v991_v56 = vsub.f32 %v972_v19, %v987_v52  ;;  %v989_v57 = vsub.f32 %v945_v20, %v981_v54 }
 0x363   : > { %v3261_v58 = vpop.eup %2644  ;;  %v998_v59 = vmul.f32 1.442695, %v991_v56  ;;  %v994_v60 = vmul.f32 1.442695, %v989_v57 }
 0x364   : > { %v1000_v62 = vsel %vm975_vm0, %v3261_v58, 0.0 }
 0x365   : > { %2646 = vpow2.f32 %v998_v59  ;;  %1001 = vadd.xlane.f32.xlu0 %v1000_v62 }
 0x366   : > { %2648 = vpow2.f32 %v994_v60 }
 0x367   : > { %2650 = vpow2.f32 %v996_v63 }
 0x368   : > { %v1128_v0 = vpop.xlane.xlu0 %1127 }
 0x369   : > { %v1138_v1 = vsub.f32 %v1097_v23, %v1128_v0 }
 0x36b   : > { %v3266_v2 = vpop.eup %2646  ;;  %v1142_v3 = vmul.f32 1.442695, %v1138_v1 }
 0x36c   : > { %v3268_v4 = vpop.eup %2648  ;;  %v1009_v5 = vsel %vm975_vm0, %v3266_v2, 0.0 }
 0x36d   : > { %2652 = vpow2.f32 %v1142_v3  ;;  %1010 = vadd.xlane.f32.xlu1 %v1009_v5  ;;  %v1003_v6 = vsel %vm975_vm0, %v3268_v4, 0.0  ;;  %v3275_v9 = vpop.eup %2650 }
 0x36e   : > { %1004 = vadd.xlane.f32.xlu2 %v1003_v6  ;;  %v1006_v13 = vsel %vm975_vm0, %v3275_v9, 0.0 }
 0x370   : > { %v1131_v7 = vpop.xlane.xlu2 %1130  ;;  %v1134_v14 = vpop.xlane.xlu0 %1133 }
 0x371   : > { %v1139_v8 = vsub.f32 %v3217_v27, %v1131_v7  ;;  %v1140_v18 = vsub.f32 %v3215_v26, %v1134_v14 }
 0x373   : > { %v3277_v10 = vpop.eup %2652  ;;  %v1144_v11 = vmul.f32 1.442695, %v1139_v8  ;;  %v1146_v21 = vmul.f32 1.442695, %v1140_v18 }
 0x374   : > { %v1150_v12 = vsel %vm975_vm0, %v3277_v10, 0.0 }
 0x375   : > { %2654 = vpow2.f32 %v1144_v11  ;;  %1151 = vadd.xlane.f32.xlu0 %v1150_v12 }
 0x376   : > { %1007 = vadd.xlane.f32.xlu2 %v1006_v13 }
 0x378   : > { %v1278_v15 = vpop.xlane.xlu2 %1277  ;;  %v3301_v28 = vpop.permute.xlu1 %1329 }
 0x379   : > { %v1288_v16 = vsub.f32 %v3225_v32, %v1278_v15 }
 0x37b   : > { %v3284_v17 = vpop.eup %2654  ;;  %v1292_v19 = vmul.f32 1.442695, %v1288_v16 }
 0x37c   : > { %v1153_v20 = vsel %vm975_vm0, %v3284_v17, 0.0 }
 0x37d   : > { %2656 = vpow2.f32 %v1292_v19 }
 0x37e   : > { %1154 = vadd.xlane.f32.xlu2 %v1153_v20  ;;  %2658 = vpow2.f32 %v1146_v21  ;;  %v1284_v32 = vpop.xlane.xlu0 %1283 }
 0x380   : > { %v1137_v27 = vpop.xlane.xlu2 %1136 }
 0x381   : > { %v1141_v41 = vsub.f32 %v3223_v31, %v1137_v27 }
 0x383   : > { %v3289_v22 = vpop.eup %2656  ;;  %v1148_v47 = vmul.f32 1.442695, %v1141_v41 }
 0x384   : > { %v1300_v23 = vsel %vm975_vm0, %v3289_v22, 0.0  ;;  %v3295_v25 = vpop.eup %2658 }
 0x385   : > { %1301 = vadd.xlane.f32.xlu0 %v1300_v23  ;;  %v1156_v26 = vsel %vm975_vm0, %v3295_v25, 0.0 }
 0x386   : > { %1204 = vrot.lane.b32.xlu1 %v3171_v53, %s2894_s29 }
 0x388   : > { %v1287_v30 = vpop.xlane.xlu2 %1286 }
 0x389   : > { %v1291_v57 = vsub.f32 %v3239_v38, %v1287_v30 }
 0x38b   : > { %v1298_v60 = vmul.f32 1.442695, %v1291_v57 }
 0x38d   : > { %1157 = vadd.xlane.f32.xlu0 %v1156_v26 }
 0x38e   : > { %1479 = vrot.lane.b32.xlu1 %v3167_v48, %s2898_s17 }
 0x390   : > { %v1431_v39 = vpop.xlane.xlu0 %1430 }
 0x391   : > { %v1439_v51 = vsub.f32 %v3247_v43, %v1431_v39 }
 0x397   : > { %v1437_v33 = vpop.xlane.xlu2 %1436 }
 0x398   : > { %v1441_v44 = vsub.f32 %v3251_v45, %v1437_v33  ;;  %v1444_v45 = vmul.f32 1.442695, %v1439_v51  ;;  %v1434_v61 = vpop.xlane.xlu0 %1433 }
 0x399   : > { %v1440_v38 = vsub.f32 %v3245_v42, %v1434_v61 }
 0x39a   : > { %v1448_v29 = vmul.f32 1.442695, %v1441_v44 }
 0x39b   : > { %v1446_v3 = vmul.f32 1.442695, %v1440_v38 }
 0x3a3   : > { %v1281_v35 = vpop.xlane.xlu1 %1280 }
 0x3a4   : > { %v1289_v37 = vsub.f32 %v3235_v36, %v1281_v35  ;;  %v1290_v36 = vsub.f32 %v3231_v34, %v1284_v32 }
 0x3a6   : > { %v1294_v46 = vmul.f32 1.442695, %v1289_v37  ;;  %v1296_v55 = vmul.f32 1.442695, %v1290_v36 }
 0x3a8   : > { %2660 = vpow2.f32 %v1294_v46 }
 0x3a9   : > { %2662 = vpow2.f32 %v1148_v47 }
 0x3aa   : > { %2664 = vpow2.f32 %v1448_v29 }
 0x3ab   : > { %v1428_v49 = vpop.xlane.xlu1 %1427 }
 0x3ac   : > { %v1438_v48 = vsub.f32 %v3241_v40, %v1428_v49 }
 0x3ae   : > { %v3307_v50 = vpop.eup %2660  ;;  %v1442_v52 = vmul.f32 1.442695, %v1438_v48 }
 0x3af   : > { %v1303_v31 = vsel %vm975_vm0, %v3307_v50, 0.0  ;;  %v3313_v54 = vpop.eup %2662 }
 0x3b0   : > { %2666 = vpow2.f32 %v1442_v52  ;;  %1304 = vadd.xlane.f32.xlu2 %v1303_v31  ;;  %v3315_v56 = vpop.eup %2664  ;;  %v1159_v43 = vsel %vm975_vm0, %v3313_v54, 0.0 }
 0x3b1   : > { %2668 = vpow2.f32 %v1444_v45  ;;  %v1459_v34 = vsel %vm975_vm0, %v3315_v56, 0.0 }
 0x3b2   : > { %2670 = vpow2.f32 %v1296_v55 }
 0x3b3   : > { %2672 = vpow2.f32 %v1298_v60 }
 0x3b4   : > { %2674 = vpow2.f32 %v1446_v3 }
 0x3b6   : > { %v3317_v40 = vpop.eup %2666 }
 0x3b7   : > { %v1450_v59 = vsel %vm975_vm0, %v3317_v40, 0.0  ;;  %v3326_v62 = vpop.eup %2668 }
 0x3b8   : > { %1460 = vadd.xlane.f32.xlu1 %v1459_v34  ;;  %1160 = vadd.xlane.f32.xlu2 %v1159_v43  ;;  %v3328_v63 = vpop.eup %2670  ;;  %v1453_v0 = vsel %vm975_vm0, %v3326_v62, 0.0 }
 0x3b9   : > { %1451 = vadd.xlane.f32.xlu0 %v1450_v59  ;;  %v1306_v1 = vsel %vm975_vm0, %v3328_v63, 0.0  ;;  %v3335_v5 = vpop.eup %2672 }
 0x3ba   : > { %v1309_v6 = vsel %vm975_vm0, %v3335_v5, 0.0  ;;  %v3339_v7 = vpop.eup %2674 }
 0x3bb   : > { %v1456_v42 = vsel %vm975_vm0, %v3339_v7, 0.0 }
 0x3c0   : > { %1454 = vadd.xlane.f32.xlu2 %v1453_v0 }
 0x3c1   : > { %1307 = vadd.xlane.f32.xlu0 %v1306_v1 }
 0x3c8   : > { %1310 = vadd.xlane.f32.xlu2 %v1309_v6 }
 0x3d0   : > { %1457 = vadd.xlane.f32.xlu2 %v1456_v42 }
 0x3d5   : > { %1354 = vrot.lane.b32.xlu0 %v3171_v53, %s2897_s3  ;;  %s3662_s3 = sld [smem:[#allocation21_spill]] (!%p2508_p1) }
 0x3d8   : > { %v1002_v8 = vpop.xlane.xlu0 %1001 }
 0x3d9   : > { %2676 = vrcp.f32 %v1002_v8 }
 0x3df   : > { %v2677_v13 = vpop.eup %2676 }
 0x3e0   : > { %v1011_v11 = vpop.xlane.xlu1 %1010  ;;  %v1016_v14 = vmul.f32 %v2677_v13, %v3261_v58 }
 0x3e1   : > { %v1005_v12 = vpop.xlane.xlu2 %1004 }
 0x3e2   : > { %2678 = vrcp.f32 %v1005_v12  ;;  %v1020_v16 = vpack.c.bf16 %v1016_v14, %v1016_v14 }
 0x3e3   : > { %2680 = vrcp.f32 %v1011_v11 }
 0x3e4   : > { %v1026_v23 = vunpack.c.l.b16 %v1020_v16 }
 0x3e8   : > { %v2679_v15 = vpop.eup %2678  ;;  %1504 = vrot.lane.b32.xlu2 %v3171_v53, %s2898_s17  ;;  %v1152_v33 = vpop.xlane.xlu0 %1151 }
 0x3e9   : > { %v1017_v18 = vmul.f32 %v2679_v15, %v3268_v4  ;;  %v1008_v19 = vpop.xlane.xlu2 %1007  ;;  %v2681_v20 = vpop.eup %2680 }
 0x3ea   : > { %2682 = vrcp.f32 %v1008_v19  ;;  %v1019_v27 = vmul.f32 %v2681_v20, %v3266_v2 }
 0x3eb   : > { %v1021_v21 = vpack.c.bf16 %v1017_v18, %v1017_v18 }
 0x3ec   : > { %v1023_v53 = vpack.c.bf16 %v1019_v27, %v1019_v27 }
 0x3ed   : > { %v1027_v26 = vunpack.c.l.b16 %v1021_v21 }
 0x3ee   : > { %v1052_v41 = vunpack.c.l.b16 %v1023_v53 }
 0x3ef   : > { %v1028_v30 = vpack.c.b16 %v1027_v26, %v1026_v23 }
 0x3f0   : > { %v2683_v32 = vpop.eup %2682 }
 0x3f1   : > { %v1155_v35 = vpop.xlane.xlu2 %1154  ;;  %2438 = vmatmul.msk.bf16.vlgmr.msrb.gmra.mxu0 %vm975_vm0, %v1028_v30  ;;  %v1018_v58 = vmul.f32 %v2683_v32, %v3275_v9 }
 0x3f2   : > { %2684 = vrcp.f32 %v1155_v35 }
 0x3f3   : > { %v1022_v37 = vpack.c.bf16 %v1018_v58, %v1018_v58  ;;  %2686 = vrcp.f32 %v1152_v33 }
 0x3f5   : > { %v1051_v4 = vunpack.c.l.b16 %v1022_v37 }
 0x3f7   : > { %v1053_v44 = vpack.c.b16 %v1052_v41, %v1051_v4 }
 0x3f8   : > { %v2685_v46 = vpop.eup %2684  ;;  %v1205_v47 = vpop.permute.xlu1 %1204 }
 0x3f9   : > { %2439 = vmatmul.msk.bf16.vlgmr.msra.gmra.mxu3 %vm975_vm0, %v1053_v44  ;;  %1217 = vmatpush.bf16.msra.mxu0 %v1205_v47  ;;  %v2687_v2 = vpop.eup %2686  ;;  %v1167_v29 = vmul.f32 %v2685_v46, %v3284_v17  ;;  %v1302_v31 = vpop.xlane.xlu0 %1301 }
 0x3fa   : > { %1342 = vmatpush.bf16.msra.mxu3 %v3301_v28  ;;  %v1166_v39 = vmul.f32 %v2687_v2, %v3277_v10  ;;  %2688 = vrcp.f32 %v1302_v31 }
 0x3fb   : > { %v1171_v9 = vpack.c.bf16 %v1167_v29, %v1167_v29 }
 0x3fc   : > { %v1170_v49 = vpack.c.bf16 %v1166_v39, %v1166_v39 }
 0x3fd   : > { %v1177_v48 = vunpack.c.l.b16 %v1171_v9 }
 0x3fe   : > { %v1176_v51 = vunpack.c.l.b16 %v1170_v49 }
 0x400   : > { %v1178_v52 = vpack.c.b16 %v1177_v48, %v1176_v51  ;;  %v1480_v36 = vpop.permute.xlu1 %1479  ;;  %v2689_v55 = vpop.eup %2688 }
 0x401   : > { %v1158_v57 = vpop.xlane.xlu0 %1157  ;;  %v1316_v28 = vmul.f32 %v2689_v55, %v3289_v22 }
 0x403   : > { %v1320_v10 = vpack.c.bf16 %v1316_v28, %v1316_v28 }
 0x405   : > { %v1326_v38 = vunpack.c.l.b16 %v1320_v10 }
 0x409   : > { %2442 = vmatmul.msk.bf16.vlgmr.msrb.gmra.mxu3 %vm975_vm0, %v1178_v52 }
 0x40a   : > { %1492 = vmatpush.bf16.msrb.mxu3 %v1480_v36 }
 0x423   : > { %v1305_v45 = vpop.xlane.xlu2 %1304 }
 0x424   : > { %2690 = vrcp.f32 %v1305_v45 }
 0x425   : > { %2692 = vrcp.f32 %v1158_v57 }
 0x42a   : > { %v2691_v17 = vpop.eup %2690 }
 0x42b   : > { %v1317_v34 = vmul.f32 %v2691_v17, %v3307_v50  ;;  %v1161_v43 = vpop.xlane.xlu2 %1160  ;;  %v2693_v60 = vpop.eup %2692 }
 0x42c   : > { %v1452_v59 = vpop.xlane.xlu0 %1451  ;;  %2694 = vrcp.f32 %v1161_v43  ;;  %v1168_v1 = vmul.f32 %v2693_v60, %v3295_v25  ;;  %v1461_v58 = vpop.xlane.xlu1 %1460 }
 0x42d   : > { %v1321_v61 = vpack.c.bf16 %v1317_v34, %v1317_v34  ;;  %2696 = vrcp.f32 %v1452_v59 }
 0x42e   : > { %v1172_v8 = vpack.c.bf16 %v1168_v1, %v1168_v1 }
 0x42f   : > { %v1327_v0 = vunpack.c.l.b16 %v1321_v61 }
 0x430   : > { %v1201_v14 = vunpack.c.l.b16 %v1172_v8 }
 0x431   : > { %v1328_v3 = vpack.c.b16 %v1327_v0, %v1326_v38 }
 0x432   : > { %v2695_v6 = vpop.eup %2694 }
 0x433   : > { %v1455_v42 = vpop.xlane.xlu2 %1454  ;;  %2446 = vmatmul.msk.bf16.vlgmr.msra.gmra.mxu3 %vm975_vm0, %v1328_v3  ;;  %v2697_v22 = vpop.eup %2696  ;;  %v1169_v11 = vmul.f32 %v2695_v6, %v3313_v54 }
 0x434   : > { %2698 = vrcp.f32 %v1455_v42  ;;  %v1308_v50 = vpop.xlane.xlu0 %1307  ;;  %v1466_v13 = vmul.f32 %v2697_v22, %v3317_v40 }
 0x435   : > { %v1173_v12 = vpack.c.bf16 %v1169_v11, %v1169_v11  ;;  %2700 = vrcp.f32 %v1308_v50 }
 0x436   : > { %v1470_v25 = vpack.c.bf16 %v1466_v13, %v1466_v13 }
 0x437   : > { %v1202_v15 = vunpack.c.l.b16 %v1173_v12 }
 0x438   : > { %v1476_v54 = vunpack.c.l.b16 %v1470_v25 }
 0x439   : > { %v1203_v18 = vpack.c.b16 %v1202_v15, %v1201_v14 }
 0x43a   : > { %v2699_v16 = vpop.eup %2698 }
 0x43b   : > { %v1467_v19 = vmul.f32 %v2699_v16, %v3326_v62  ;;  %v1311_v20 = vpop.xlane.xlu2 %1310  ;;  %v2701_v21 = vpop.eup %2700  ;;  %2443 = vmatmul.msk.bf16.vlgmr.msra.gmra.mxu0 %vm975_vm0, %v1203_v18 }
 0x43c   : > { %2702 = vrcp.f32 %v1311_v20  ;;  %v1318_v27 = vmul.f32 %v2701_v21, %v3328_v63 }
 0x43d   : > { %v1471_v23 = vpack.c.bf16 %v1467_v19, %v1467_v19 }
 0x43e   : > { %v1322_v40 = vpack.c.bf16 %v1318_v27, %v1318_v27 }
 0x43f   : > { %v1477_v26 = vunpack.c.l.b16 %v1471_v23 }
 0x440   : > { %v1351_v53 = vunpack.c.l.b16 %v1322_v40 }
 0x441   : > { %v1478_v30 = vpack.c.b16 %v1477_v26, %v1476_v54 }
 0x442   : > { %v2703_v32 = vpop.eup %2702 }
 0x443   : > { %v1319_v33 = vmul.f32 %v2703_v32, %v3335_v5  ;;  %v1458_v35 = vpop.xlane.xlu2 %1457  ;;  %2450 = vmatmul.msk.bf16.vlgmr.msrb.gmra.mxu3 %vm975_vm0, %v1478_v30 }
 0x444   : > { %2704 = vrcp.f32 %v1458_v35 }
 0x445   : > { %v1323_v62 = vpack.c.bf16 %v1319_v33, %v1319_v33  ;;  %2706 = vrcp.f32 %v1461_v58 }
 0x447   : > { %v1352_v37 = vunpack.c.l.b16 %v1323_v62  ;;  %v1355_v4 = vpop.permute.xlu0 %1354 }
 0x448   : > { %1367 = vmatpush.bf16.msrb.mxu0 %v1355_v4  ;;  %v2530_v4 = vld [vmem:[%s3087_s12 + $0x8] sm:$0xff] }
 0x449   : > { %v1353_v41 = vpack.c.b16 %v1352_v37, %v1351_v53  ;;  %1621 = vmatpush.bf16.msra.mxu1 %v2530_v4 }
 0x44a   : > { %v2705_v44 = vpop.eup %2704 }
 0x44b   : > { %v1505_v46 = vpop.permute.xlu2 %1504  ;;  %2447 = vmatmul.msk.bf16.vlgmr.msrb.gmra.mxu0 %vm975_vm0, %v1353_v41  ;;  %v2707_v63 = vpop.eup %2706  ;;  %v1468_v5 = vmul.f32 %v2705_v44, %v3339_v7  ;;  %v2529_v41 = vld [vmem:[%s3087_s12] sm:$0xff] }
 0x44c   : > { %1517 = vmatpush.bf16.msra.mxu0 %v1505_v46  ;;  %v1469_v47 = vmul.f32 %v2707_v63, %v3315_v56 }
 0x44d   : > { %v1472_v2 = vpack.c.bf16 %v1468_v5, %v1468_v5  ;;  %1622 = vmatpush.bf16.msra.mxu1 %v2529_v41 }
 0x44e   : > { %v1473_v29 = vpack.c.bf16 %v1469_v47, %v1469_v47 }
 0x44f   : > { %v1501_v39 = vunpack.c.l.b16 %v1472_v2 }
 0x450   : > { %v1502_v9 = vunpack.c.l.b16 %v1473_v29 }
 0x452   : > { %v1503_v49 = vpack.c.b16 %v1502_v9, %v1501_v39 }
 0x45b   : > { %2451 = vmatmul.msk.bf16.vlgmr.msra.gmra.mxu0 %vm975_vm0, %v1503_v49 }
 0x46e   : > { %v1044_v43 = vpop.f32.mrf.mxu0 }
 0x46f   : > { %v1074_v46 = vpack.c.bf16 %v1044_v43, %v1044_v43 }
 0x471   : > { %v1532_v47 = vunpack.c.l.b16 %v1074_v46 }
 0x476   : > { %v1046_v59 = vpop.f32.mrf.mxu0 }
 0x477   : > { %v1075_v44 = vpack.c.bf16 %v1046_v59, %v1046_v59  ;;  %v2725_v59 = vld [vmem:[#allocation2 + $0x8] sm:$0xff] }
 0x479   : > { %v1533_v5 = vunpack.c.l.b16 %v1075_v44 }
 0x47b   : > { %v1536_v2 = vpack.c.b16 %v1533_v5, %v1532_v47 }
 0x47c   : > { %v1069_v48 = vpop.f32.mrf.mxu3 }
 0x47d   : > { %v1076_v51 = vpack.c.bf16 %v1069_v48, %v1069_v48 }
 0x47f   : > { %v3372_v31 = vunpack.c.l.b16 %v1076_v51 }
 0x484   : > { %v1071_v52 = vpop.f32.mrf.mxu3 }
 0x485   : > { %v1077_v36 = vpack.c.bf16 %v1071_v52, %v1071_v52 }
 0x487   : > { %v3374_v45 = vunpack.c.l.b16 %v1077_v36 }
 0x489   : > { %v1537_v7 = vpack.c.b16 %v3374_v45, %v3372_v31 }
 0x48c   : > { %v1194_v55 = vpop.f32.mrf.mxu3 }
 0x48d   : > { %v1224_v56 = vpack.c.bf16 %v1194_v55, %v1194_v55 }
 0x48f   : > { %v1542_v17 = vunpack.c.l.b16 %v1224_v56 }
 0x494   : > { %v1196_v57 = vpop.f32.mrf.mxu3 }
 0x495   : > { %v1225_v28 = vpack.c.bf16 %v1196_v57, %v1196_v57 }
 0x497   : > { %v1543_v10 = vunpack.c.l.b16 %v1225_v28 }
 0x499   : > { %v1546_v34 = vpack.c.b16 %v1543_v10, %v1542_v17  ;;  %v2724_v17 = vld [vmem:[#allocation2] sm:$0xff] }
 0x49b   : > { %1548 = vrot.lane.b32.xlu0 %v1546_v34, %s2899_s23 }
 0x4b6   : > { %v1344_v60 = vpop.f32.mrf.mxu3 }
 0x4b7   : > { %v1374_v38 = vpack.c.bf16 %v1344_v60, %v1344_v60  ;;  %v2726_v60 = vld [vmem:[#allocation2 + $0x10] sm:$0xff] }
 0x4b8   : > { %v1219_v61 = vpop.f32.mrf.mxu0 }
 0x4b9   : > { %v1556_v3 = vunpack.c.l.b16 %v1374_v38  ;;  %v1226_v11 = vpack.c.bf16 %v1219_v61, %v1219_v61 }
 0x4bb   : > { %v1544_v13 = vunpack.c.l.b16 %v1226_v11 }
 0x4be   : > { %v1346_v0 = vpop.f32.mrf.mxu3 }
 0x4bf   : > { %v1375_v1 = vpack.c.bf16 %v1346_v0, %v1346_v0 }
 0x4c0   : > { %v1221_v42 = vpop.f32.mrf.mxu0 }
 0x4c1   : > { %v1557_v6 = vunpack.c.l.b16 %v1375_v1  ;;  %v1227_v8 = vpack.c.bf16 %v1221_v42, %v1221_v42  ;;  %v2727_v1 = vld [vmem:[#allocation2 + $0x18] sm:$0xff] }
 0x4c3   : > { %v1560_v22 = vpack.c.b16 %v1557_v6, %v1556_v3  ;;  %v1545_v12 = vunpack.c.l.b16 %v1227_v8 }
 0x4c5   : > { %1562 = vrot.lane.b32.xlu0 %v1560_v22, %s2900_s30  ;;  %v1547_v15 = vpack.c.b16 %v1545_v12, %v1544_v13 }
 0x4c6   : > { %v1494_v50 = vpop.f32.mrf.mxu3 }
 0x4c7   : > { %v1524_v16 = vpack.c.bf16 %v1494_v50, %v1494_v50 }
 0x4c8   : > { %v1369_v14 = vpop.f32.mrf.mxu0 }
 0x4c9   : > { %v1570_v19 = vunpack.c.l.b16 %v1524_v16  ;;  %v1376_v26 = vpack.c.bf16 %v1369_v14, %v1369_v14 }
 0x4cb   : > { %v1558_v30 = vunpack.c.l.b16 %v1376_v26 }
 0x4cd   : > { %1550 = vrot.lane.b32.xlu0 %v1547_v15, %s2899_s23 }
 0x4ce   : > { %v1496_v18 = vpop.f32.mrf.mxu3 }
 0x4cf   : > { %v1525_v25 = vpack.c.bf16 %v1496_v18, %v1496_v18 }
 0x4d0   : > { %v1371_v21 = vpop.f32.mrf.mxu0 }
 0x4d1   : > { %v1571_v20 = vunpack.c.l.b16 %v1525_v25  ;;  %v1377_v54 = vpack.c.bf16 %v1371_v21, %v1371_v21 }
 0x4d3   : > { %v1574_v23 = vpack.c.b16 %v1571_v20, %v1570_v19  ;;  %v1559_v27 = vunpack.c.l.b16 %v1377_v54 }
 0x4d5   : > { %1576 = vrot.lane.b32.xlu2 %v1574_v23, %s2901_s19  ;;  %v1561_v40 = vpack.c.b16 %v1559_v27, %v1558_v30 }
 0x4d8   : > { %v1519_v32 = vpop.f32.mrf.mxu0 }
 0x4d9   : > { %v1526_v33 = vpack.c.bf16 %v1519_v32, %v1519_v32 }
 0x4db   : > { %v1572_v62 = vunpack.c.l.b16 %v1526_v33 }
 0x4dd   : > { %1564 = vrot.lane.b32.xlu2 %v1561_v40, %s2900_s30  ;;  %v2532_v40 = vld [vmem:[%s3096_s25 + $0x8] sm:$0xff] }
 0x4de   : > { %1776 = vmatpush.bf16.msra.mxu2 %v2532_v40 }
 0x4e0   : > { %v1521_v35 = vpop.f32.mrf.mxu0 }
 0x4e1   : > { %v1527_v58 = vpack.c.bf16 %v1521_v35, %v1521_v35 }
 0x4e3   : > { %v1573_v53 = vunpack.c.l.b16 %v1527_v58  ;;  %v2531_v58 = vld [vmem:[%s3096_s25] sm:$0xff] }
 0x4e4   : > { %1777 = vmatpush.bf16.msra.mxu2 %v2531_v58 }
 0x4e5   : > { %v1575_v37 = vpack.c.b16 %v1573_v53, %v1572_v62 }
 0x4e7   : > { %1578 = vrot.lane.b32.xlu0 %v1575_v37, %s2901_s19  ;;  %s3663_s19 = sld [smem:[#allocation22_spill]] (!%p2508_p1) }
 0x50d   : > { %v1549_v63 = vpop.permute.xlu0 %1548 }
 0x50e   : > { %v1582_v29 = vsel %vm927_vm15, %v1536_v2, %v1549_v63 }
 0x52f   : > { %v1577_v9 = vpop.permute.xlu2 %1576 }
 0x537   : > { %v1563_v39 = vpop.permute.xlu0 %1562  ;;  %v1565_v36 = vpop.permute.xlu2 %1564 }
 0x538   : > { %v1587_v49 = vsel %vm975_vm0, %v1582_v29, %v1563_v39 }
 0x539   : > { %v1592_v48 = vsel %vm1590_vm2, %v1587_v49, %v1577_v9 }
 0x53a   : > { %2460 = vmatmul.msk.bf16.vlgmr.msra.gmra.mxu1 %vm763_vm1, %v1592_v48  ;;  %v2630_v48 = vld [vmem:[%s3661_s20] ss:$0 sm:$0xff]  ;;  %s3664_s20 = sld [smem:[#allocation23_spill]] (!%p2508_p1) }
 0x53f   : > { %v1551_v51 = vpop.permute.xlu0 %1550 }
 0x540   : > { %v1585_v52 = vsel %vm927_vm15, %v1537_v7, %v1551_v51 }
 0x541   : > { %v1589_v56 = vsel %vm975_vm0, %v1585_v52, %v1565_v36 }
 0x559   : > { %v1579_v55 = vpop.permute.xlu0 %1578 }
 0x55a   : > { %v1594_v57 = vsel %vm1590_vm2, %v1589_v56, %v1579_v55  ;;  %v2631_v55 = vld [vmem:[%s719_s13] ss:$0 sm:$0xff] }
 0x55b   : > { %2461 = vmatmul.msk.bf16.gmra.mxu1 %vm763_vm1, %v1594_v57 }
 0x5b7   : > { %v1624_v28 = vpop.f32.mrf.mxu1 }
 0x5b8   : > { %v3391_v10 = vadd.f32 %v2724_v17, %v1624_v28 }
 0x5ba   : > { %v1640_v34 = vsel %vm763_vm1, %v3391_v10, 0.0 }
 0x5bb   : > { %1641 = vadd.xlane.f32.xlu1 %v1640_v34 }
 0x5bf   : > { %v1626_v43 = vpop.f32.mrf.mxu1 }
 0x5c0   : > { %v3395_v31 = vadd.f32 %v2725_v59, %v1626_v43 }
 0x5c2   : > { %v1643_v45 = vsel %vm763_vm1, %v3395_v31, 0.0 }
 0x5c3   : > { %1644 = vadd.xlane.f32.xlu2 %v1643_v45 }
 0x5d8   : > { %v1629_v7 = vpop.f32.mrf.mxu1 }
 0x5d9   : > { %v3399_v61 = vadd.f32 %v2726_v60, %v1629_v7 }
 0x5db   : > { %v1646_v38 = vsel %vm763_vm1, %v3399_v61, 0.0 }
 0x5dc   : > { %1647 = vadd.xlane.f32.xlu0 %v1646_v38 }
 0x5e0   : > { %v1631_v0 = vpop.f32.mrf.mxu1 }
 0x5e1   : > { %v3403_v3 = vadd.f32 %v2727_v1, %v1631_v0 }
 0x5e3   : > { %v1649_v6 = vsel %vm763_vm1, %v3403_v3, 0.0 }
 0x5e4   : > { %1650 = vadd.xlane.f32.xlu1 %v1649_v6 }
 0x62e   : > { %v1642_v42 = vpop.xlane.xlu1 %1641 }
 0x62f   : > { %v1652_v22 = vmul.f32 %v1642_v42, %v3135_v24 }
 0x631   : > { %v1656_v8 = vsub.f32 %v3391_v10, %v1652_v22 }
 0x633   : > { %v1660_v11 = vmul.f32 %v1656_v8, %v1656_v8 }
 0x635   : > { %v1664_v50 = vsel %vm763_vm1, %v1660_v11, 0.0 }
 0x636   : > { %v1645_v12 = vpop.xlane.xlu2 %1644  ;;  %1665 = vadd.xlane.f32.xlu1 %v1664_v50 }
 0x637   : > { %v1653_v13 = vmul.f32 %v1645_v12, %v3135_v24 }
 0x639   : > { %v1657_v14 = vsub.f32 %v3395_v31, %v1653_v13 }
 0x63b   : > { %v1661_v15 = vmul.f32 %v1657_v14, %v1657_v14 }
 0x63d   : > { %v1667_v16 = vsel %vm763_vm1, %v1661_v15, 0.0 }
 0x63e   : > { %1668 = vadd.xlane.f32.xlu1 %v1667_v16 }
 0x64f   : > { %v1648_v18 = vpop.xlane.xlu0 %1647 }
 0x650   : > { %v1654_v25 = vmul.f32 %v1648_v18, %v3135_v24 }
 0x652   : > { %v3415_v19 = vsub.f32 %v3399_v61, %v1654_v25 }
 0x654   : > { %v1662_v20 = vmul.f32 %v3415_v19, %v3415_v19 }
 0x656   : > { %v1670_v21 = vsel %vm763_vm1, %v1662_v20, 0.0 }
 0x657   : > { %1671 = vadd.xlane.f32.xlu1 %v1670_v21  ;;  %v1651_v23 = vpop.xlane.xlu1 %1650 }
 0x658   : > { %v1655_v54 = vmul.f32 %v1651_v23, %v3135_v24 }
 0x65a   : > { %v3422_v26 = vsub.f32 %v3403_v3, %v1655_v54 }
 0x65c   : > { %v1663_v27 = vmul.f32 %v3422_v26, %v3422_v26 }
 0x65e   : > { %v1673_v30 = vsel %vm763_vm1, %v1663_v27, 0.0 }
 0x65f   : > { %1674 = vadd.xlane.f32.xlu1 %v1673_v30 }
 0x6a9   : > { %v1666_v32 = vpop.xlane.xlu1 %1665 }
 0x6aa   : > { %v1676_v33 = vmul.f32 %v1666_v32, %v3135_v24 }
 0x6ac   : > { %v1680_v35 = vadd.f32 1e-05, %v1676_v33 }
 0x6ae   : > { %2708 = vrsqrt.f32 %v1680_v35  ;;  %vm1690_vm4 = vweird.f32 %v1680_v35 }
 0x6b1   : > { %v1669_v62 = vpop.xlane.xlu1 %1668 }
 0x6b2   : > { %v1677_v53 = vmul.f32 %v1669_v62, %v3135_v24  ;;  %v2539_v62 = vld [vmem:[%s3106_s16 + $0x30] sm:$0xff] }
 0x6b4   : > { %v2709_v37 = vpop.eup %2708  ;;  %v1681_v4 = vadd.f32 1e-05, %v1677_v53 }
 0x6b5   : > { %v1685_v41 = vmul.f32 %v2709_v37, %v1680_v35  ;;  %vm1691_vm3 = vweird.f32 %v2709_v37  ;;  %v2540_v35 = vld [vmem:[%s3106_s16 + $0x38] sm:$0xff] }
 0x6b6   : > { %2710 = vrsqrt.f32 %v1681_v4  ;;  %vm1692_vm5 = vmor %vm1690_vm4, %vm1691_vm3  ;;  %vm1700_vm7 = vweird.f32 %v1681_v4  ;;  %2035 = vmatpush.bf16.msra.mxu3 %v2540_v35 }
 0x6b7   : > { %v1686_v44 = vmul.f32 %v2709_v37, %v1685_v41 }
 0x6b9   : > { %v1687_v46 = vmul.f32 0.5, %v1686_v44 }
 0x6ba   : > { %2036 = vmatpush.bf16.msra.mxu3 %v2539_v62 }
 0x6bb   : > { %v1688_v63 = vsub.f32 1.5, %v1687_v46  ;;  %v2538_v46 = vld [vmem:[%s3106_s16 + $0x28] sm:$0xff] }
 0x6bc   : > { %v2711_v5 = vpop.eup %2710 }
 0x6bd   : > { %v1689_v47 = vmul.f32 %v2709_v37, %v1688_v63  ;;  %v1695_v2 = vmul.f32 %v2711_v5, %v1681_v4  ;;  %vm1701_vm6 = vweird.f32 %v2711_v5 }
 0x6be   : > { %vm1702_vm8 = vmor %vm1700_vm7, %vm1701_vm6  ;;  %2037 = vmatpush.bf16.msra.mxu3 %v2538_v46 }
 0x6bf   : > { %v1696_v29 = vmul.f32 %v2711_v5, %v1695_v2  ;;  %v1693_v39 = vsel %vm1692_vm5, %v2709_v37, %v1689_v47 }
 0x6c0   : > { %v1724_v51 = vmul.f32 %v1693_v39, %v1656_v8 }
 0x6c1   : > { %v1697_v9 = vmul.f32 0.5, %v1696_v29  ;;  %v2537_v29 = vld [vmem:[%s3106_s16 + $0x20] sm:$0xff] }
 0x6c2   : > { %v1731_v56 = vmul.f32 %v2630_v48, %v1724_v51  ;;  %2038 = vmatpush.bf16.msra.mxu3 %v2537_v29 }
 0x6c3   : > { %v1698_v49 = vsub.f32 1.5, %v1697_v9 }
 0x6c4   : > { %v1738_v34 = vadd.f32 %v2631_v55, %v1731_v56 }
 0x6c5   : > { %v1699_v52 = vmul.f32 %v2711_v5, %v1698_v49 }
 0x6c7   : > { %v1703_v36 = vsel %vm1702_vm8, %v2711_v5, %v1699_v52  ;;  %v2536_v52 = vld [vmem:[%s3106_s16 + $0x18] sm:$0xff] }
 0x6c8   : > { %v1725_v57 = vmul.f32 %v1703_v36, %v1657_v14  ;;  %2039 = vmatpush.bf16.msra.mxu3 %v2536_v52 }
 0x6ca   : > { %v1732_v28 = vmul.f32 %v2630_v48, %v1725_v57  ;;  %v1672_v17 = vpop.xlane.xlu1 %1671 }
 0x6cb   : > { %v1678_v59 = vmul.f32 %v1672_v17, %v3135_v24 }
 0x6cc   : > { %v1739_v43 = vadd.f32 %v2631_v55, %v1732_v28 }
 0x6cd   : > { %v1682_v45 = vadd.f32 1e-05, %v1678_v59 }
 0x6ce   : > { %v1742_v7 = vpack.c.bf16 %v1739_v43, %v1738_v34  ;;  %v2535_v43 = vld [vmem:[%s3106_s16 + $0x10] sm:$0xff] }
 0x6cf   : > { %2712 = vrsqrt.f32 %v1682_v45  ;;  %vm1710_vm10 = vweird.f32 %v1682_v45  ;;  %2040 = vmatpush.bf16.msra.mxu3 %v2535_v43 }
 0x6d0   : > { %2470 = vmatmul.msk.bf16.vlgmr.msra.gmra.mxu2 %vm763_vm1, %v1742_v7 }
 0x6d2   : > { %v1675_v60 = vpop.xlane.xlu1 %1674 }
 0x6d3   : > { %v1679_v38 = vmul.f32 %v1675_v60, %v3135_v24 }
 0x6d5   : > { %v2713_v0 = vpop.eup %2712  ;;  %v1683_v1 = vadd.f32 1e-05, %v1679_v38 }
 0x6d6   : > { %v1705_v6 = vmul.f32 %v2713_v0, %v1682_v45  ;;  %vm1711_vm9 = vweird.f32 %v2713_v0 }
 0x6d7   : > { %2714 = vrsqrt.f32 %v1683_v1  ;;  %vm1712_vm11 = vmor %vm1710_vm10, %vm1711_vm9  ;;  %vm1720_vm13 = vweird.f32 %v1683_v1 }
 0x6d8   : > { %v1706_v42 = vmul.f32 %v2713_v0, %v1705_v6  ;;  %v2534_v6 = vld [vmem:[%s3106_s16 + $0x8] sm:$0xff] }
 0x6d9   : > { %2041 = vmatpush.bf16.msra.mxu3 %v2534_v6 }
 0x6da   : > { %v1707_v22 = vmul.f32 0.5, %v1706_v42 }
 0x6dc   : > { %v1708_v8 = vsub.f32 1.5, %v1707_v22 }
 0x6dd   : > { %v2715_v11 = vpop.eup %2714 }
 0x6de   : > { %v1709_v50 = vmul.f32 %v2713_v0, %v1708_v8  ;;  %v1715_v12 = vmul.f32 %v2715_v11, %v1683_v1  ;;  %vm1721_vm12 = vweird.f32 %v2715_v11 }
 0x6df   : > { %vm1722_vm14 = vmor %vm1720_vm13, %vm1721_vm12 }
 0x6e0   : > { %v1716_v13 = vmul.f32 %v2715_v11, %v1715_v12  ;;  %v1713_v14 = vsel %vm1712_vm11, %v2713_v0, %v1709_v50  ;;  %v2533_v12 = vld [vmem:[%s3106_s16] sm:$0xff] }
 0x6e1   : > { %v1726_v18 = vmul.f32 %v1713_v14, %v3415_v19  ;;  %v3452_v19 = vld [vmem:[%s727_s0] ss:$0 sm:$0xff]  ;;  %2042 = vmatpush.bf16.msra.mxu3 %v2533_v12 }
 0x6e2   : > { %v1717_v15 = vmul.f32 0.5, %v1716_v13 }
 0x6e3   : > { %v1733_v23 = vmul.f32 %v2630_v48, %v1726_v18 }
 0x6e4   : > { %v1718_v16 = vsub.f32 1.5, %v1717_v15 }
 0x6e5   : > { %v1740_v27 = vadd.f32 %v2631_v55, %v1733_v23 }
 0x6e6   : > { %v1719_v25 = vmul.f32 %v2715_v11, %v1718_v16 }
 0x6e8   : > { %v1723_v20 = vsel %vm1722_vm14, %v2715_v11, %v1719_v25 }
 0x6e9   : > { %v1727_v21 = vmul.f32 %v1723_v20, %v3422_v26 }
 0x6eb   : > { %v1734_v54 = vmul.f32 %v2630_v48, %v1727_v21 }
 0x6ed   : > { %v1741_v30 = vadd.f32 %v2631_v55, %v1734_v54 }
 0x6ef   : > { %v1743_v32 = vpack.c.bf16 %v1741_v30, %v1740_v27 }
 0x6f1   : > { %2471 = vmatmul.msk.bf16.gmra.mxu2 %vm763_vm1, %v1743_v32 }
 0x753   : > { %v1779_v40 = vpop.f32.mrf.mxu2 }
 0x754   : > { %v3455_v33 = vadd.f32 %v3452_v19, %v1779_v40 }
 0x756   : > { %v3459_v26 = vmul.f32 0.70710677, %v3455_v33 }
 0x758   : > { %v1797_v58 = vmul.f32 %v3459_v26, %v3459_v26 }
 0x75a   : > { %v1798_v53 = vmin.f32 %v1797_v58, 16.0 }
 0x75b   : > { %v1781_v37 = vpop.f32.mrf.mxu2 }
 0x75c   : > { %v1799_v4 = vmul.f32 2.1237322e-06, %v1798_v53  ;;  %v1810_v41 = vmul.f32 3.8918573e-05, %v1798_v53  ;;  %v3465_v44 = vadd.f32 %v3452_v19, %v1781_v37 }
 0x75e   : > { %v1800_v63 = vadd.f32 0.00028619796, %v1799_v4  ;;  %v1811_v5 = vadd.f32 0.001143296, %v1810_v41  ;;  %v3469_v47 = vmul.f32 0.70710677, %v3465_v44 }
 0x760   : > { %v1812_v2 = vmul.f32 %v1811_v5, %v1798_v53  ;;  %v1801_v39 = vmul.f32 %v1800_v63, %v1798_v53  ;;  %v1837_v9 = vmul.f32 %v3469_v47, %v3469_v47 }
 0x762   : > { %v1813_v49 = vadd.f32 0.014752088, %v1812_v2  ;;  %v1838_v48 = vmin.f32 %v1837_v9, 16.0  ;;  %v1802_v36 = vadd.f32 0.0036580483, %v1801_v39 }
 0x764   : > { %v1814_v51 = vmul.f32 %v1813_v49, %v1798_v53  ;;  %v1839_v55 = vmul.f32 2.1237322e-06, %v1838_v48  ;;  %v1850_v56 = vmul.f32 3.8918573e-05, %v1838_v48  ;;  %v1803_v59 = vmul.f32 %v1802_v36, %v1798_v53 }
 0x766   : > { %v1815_v57 = vadd.f32 0.112945676, %v1814_v51  ;;  %v1840_v28 = vadd.f32 0.00028619796, %v1839_v55  ;;  %v1851_v17 = vadd.f32 0.001143296, %v1850_v56 }
 0x767   : > { %v1804_v42 = vadd.f32 0.05243302, %v1803_v59 }
 0x768   : > { %v1816_v34 = vmul.f32 %v1815_v57, %v1798_v53  ;;  %v1841_v45 = vmul.f32 %v1840_v28, %v1838_v48  ;;  %v1852_v7 = vmul.f32 %v1851_v17, %v1838_v48 }
 0x769   : > { %v1805_v13 = vmul.f32 %v1804_v42, %v1798_v53 }
 0x76a   : > { %v1817_v60 = vadd.f32 0.4994258, %v1816_v34  ;;  %v1842_v38 = vadd.f32 0.0036580483, %v1841_v45  ;;  %v1853_v0 = vadd.f32 0.014752088, %v1852_v7 }
 0x76b   : > { %v1806_v18 = vadd.f32 0.18741608, %v1805_v13 }
 0x76c   : > { %v1818_v1 = vmul.f32 %v1817_v60, %v1798_v53  ;;  %v1854_v22 = vmul.f32 %v1853_v0, %v1838_v48  ;;  %v1843_v11 = vmul.f32 %v1842_v38, %v1838_v48 }
 0x76d   : > { %v1807_v40 = vmul.f32 %v1806_v18, %v1798_v53 }
 0x76e   : > { %v1819_v8 = vadd.f32 1.0, %v1818_v1  ;;  %v1855_v50 = vadd.f32 0.112945676, %v1854_v22  ;;  %v1844_v15 = vadd.f32 0.05243302, %v1843_v11 }
 0x76f   : > { %v1808_v63 = vadd.f32 1.1283791, %v1807_v40 }
 0x770   : > { %2716 = vrcp.f32 %v1819_v8  ;;  %v1856_v14 = vmul.f32 %v1855_v50, %v1838_v48  ;;  %v1845_v23 = vmul.f32 %v1844_v15, %v1838_v48  ;;  %v1831_v4 = vand.u32 2147483648, %v1819_v8 }
 0x771   : > { %v1829_v41 = vand.u32 2147483647, %v1819_v8  ;;  %vm1825_vm0 = vweird.f32 %v1819_v8 }
 0x772   : > { %v1857_v16 = vadd.f32 0.4994258, %v1856_v14  ;;  %v1846_v58 = vadd.f32 0.18741608, %v1845_v23  ;;  %v1832_v52 = vor.u32 1.1754944e-38, %v1831_v4 }
 0x773   : > { %vm1830_vm3 = vcmp.eq.f32.partialorder %v1829_v41, 8.507059e+37 }
 0x774   : > { %v1858_v25 = vmul.f32 %v1857_v16, %v1838_v48  ;;  %v1784_v20 = vpop.f32.mrf.mxu2  ;;  %v1847_v29 = vmul.f32 %v1846_v58, %v1838_v48  ;;  %v1809_v48 = vmul.f32 %v1808_v63, %v3459_v26  ;;  %v1789_v58 = vmul.f32 0.5, %v3455_v33 }
 0x775   : > { %v3479_v54 = vadd.f32 %v3452_v19, %v1784_v20 }
 0x776   : > { %v2717_v21 = vpop.eup %2716  ;;  %v1859_v30 = vadd.f32 1.0, %v1858_v25  ;;  %v1848_v17 = vadd.f32 1.1283791, %v1847_v29 }
 0x777   : > { %v1821_v27 = vmul.f32 %v2717_v21, %v1819_v8  ;;  %v3482_v32 = vmul.f32 0.70710677, %v3479_v54  ;;  %vm1826_vm15 = vweird.f32 %v2717_v21 }
 0x778   : > { %2718 = vrcp.f32 %v1859_v30  ;;  %vm1827_vm2 = vmor %vm1825_vm0, %vm1826_vm15  ;;  %v1869_v43 = vand.u32 2147483647, %v1859_v30  ;;  %v1849_v6 = vmul.f32 %v1848_v17, %v3469_v47  ;;  %vm1865_vm5 = vweird.f32 %v1859_v30 }
 0x779   : > { %v1822_v35 = vsub.f32 1.0, %v1821_v27  ;;  %v1877_v62 = vmul.f32 %v3482_v32, %v3482_v32 }
 0x77a   : > { %vm1870_vm7 = vcmp.eq.f32.partialorder %v1869_v43, 8.507059e+37 }
 0x77b   : > { %v1823_v37 = vmul.f32 %v2717_v21, %v1822_v35  ;;  %v3486_v46 = vmin.f32 %v1877_v62, 16.0  ;;  %v1790_v62 = vmul.f32 0.5, %v3465_v44 }
 0x77c   : > { %v1786_v2 = vpop.f32.mrf.mxu2 }
 0x77d   : > { %v1824_v5 = vadd.f32 %v2717_v21, %v1823_v37  ;;  %v1879_v53 = vmul.f32 2.1237322e-06, %v3486_v46  ;;  %v3490_v39 = vadd.f32 %v3452_v19, %v1786_v2  ;;  %v1890_v9 = vmul.f32 3.8918573e-05, %v3486_v46 }
 0x77e   : > { %v2719_v49 = vpop.eup %2718  ;;  %v1871_v19 = vand.u32 2147483648, %v1859_v30 }
 0x77f   : > { %v1828_v51 = vsel %vm1827_vm2, %v2717_v21, %v1824_v5  ;;  %v1861_v36 = vmul.f32 %v2719_v49, %v1859_v30  ;;  %v1880_v55 = vadd.f32 0.00028619796, %v1879_v53  ;;  %v3494_v57 = vmul.f32 0.70710677, %v3490_v39 }
 0x780   : > { %v1833_v56 = vsel %vm1830_vm3, %v1832_v52, %v1828_v51  ;;  %v1891_v28 = vadd.f32 0.001143296, %v1890_v9  ;;  %vm1866_vm4 = vweird.f32 %v2719_v49  ;;  %v1872_v42 = vor.u32 1.1754944e-38, %v1871_v19 }
 0x781   : > { %v1862_v34 = vsub.f32 1.0, %v1861_v36  ;;  %v1917_v59 = vmul.f32 %v3494_v57, %v3494_v57  ;;  %v1834_v7 = vmul.f32 %v1833_v56, %v1809_v48  ;;  %v1881_v38 = vmul.f32 %v1880_v55, %v3486_v46  ;;  %vm1867_vm6 = vmor %vm1865_vm5, %vm1866_vm4 }
 0x782   : > { %v1892_v45 = vmul.f32 %v1891_v28, %v3486_v46 }
 0x783   : > { %v1863_v60 = vmul.f32 %v2719_v49, %v1862_v34  ;;  %v3501_v0 = vmin.f32 %v1917_v59, 16.0  ;;  %v2472_v50 = vclamps-f32 %v1834_v7, 1.0  ;;  %v1882_v13 = vadd.f32 0.0036580483, %v1881_v38 }
 0x784   : > { %v1893_v1 = vadd.f32 0.014752088, %v1892_v45 }
 0x785   : > { %v1864_v26 = vadd.f32 %v2719_v49, %v1863_v60  ;;  %v1919_v22 = vmul.f32 2.1237322e-06, %v3501_v0  ;;  %v1930_v11 = vmul.f32 3.8918573e-05, %v3501_v0  ;;  %v1957_v23 = vadd.f32 1.0, %v2472_v50 }
 0x786   : > { %v1894_v8 = vmul.f32 %v1893_v1, %v3486_v46  ;;  %v1883_v30 = vmul.f32 %v1882_v13, %v3486_v46 }
 0x787   : > { %v1868_v12 = vsel %vm1867_vm6, %v2719_v49, %v1864_v26  ;;  %v1920_v15 = vadd.f32 0.00028619796, %v1919_v22  ;;  %v1931_v18 = vadd.f32 0.001143296, %v1930_v11  ;;  %v1961_v5 = vmul.f32 %v1957_v23, %v1789_v58 }
 0x788   : > { %v1873_v14 = vsel %vm1870_vm7, %v1872_v42, %v1868_v12  ;;  %v1895_v16 = vadd.f32 0.112945676, %v1894_v8  ;;  %v1884_v29 = vadd.f32 0.05243302, %v1883_v30  ;;  %v1791_v30 = vmul.f32 0.5, %v3479_v54 }
 0x789   : > { %v1874_v25 = vmul.f32 %v1873_v14, %v1849_v6  ;;  %v1921_v47 = vmul.f32 %v1920_v15, %v3501_v0  ;;  %v1932_v21 = vmul.f32 %v1931_v18, %v3501_v0 }
 0x78a   : > { %v1896_v20 = vmul.f32 %v1895_v16, %v3486_v46  ;;  %v1885_v44 = vmul.f32 %v1884_v29, %v3486_v46 }
 0x78b   : > { %v2473_v27 = vclamps-f32 %v1874_v25, 1.0  ;;  %v1933_v35 = vadd.f32 0.014752088, %v1932_v21  ;;  %v1922_v4 = vadd.f32 0.0036580483, %v1921_v47 }
 0x78c   : > { %v1897_v40 = vadd.f32 0.4994258, %v1896_v20  ;;  %v1886_v28 = vadd.f32 0.18741608, %v1885_v44 }
 0x78d   : > { %v1958_v37 = vadd.f32 1.0, %v2473_v27  ;;  %v1934_v63 = vmul.f32 %v1933_v35, %v3501_v0  ;;  %v1923_v51 = vmul.f32 %v1922_v4, %v3501_v0 }
 0x78e   : > { %v1898_v41 = vmul.f32 %v1897_v40, %v3486_v46  ;;  %v1887_v19 = vmul.f32 %v1886_v28, %v3486_v46  ;;  %v1792_v40 = vmul.f32 0.5, %v3490_v39 }
 0x78f   : > { %v1962_v2 = vmul.f32 %v1958_v37, %v1790_v62  ;;  %v1935_v9 = vadd.f32 0.112945676, %v1934_v63  ;;  %v1924_v52 = vadd.f32 0.05243302, %v1923_v51 }
 0x790   : > { %v1899_v53 = vadd.f32 1.0, %v1898_v41  ;;  %v1888_v1 = vadd.f32 1.1283791, %v1887_v19 }
 0x791   : > { %v1965_v49 = vpack.c.bf16 %v1962_v2, %v1961_v5  ;;  %v1936_v33 = vmul.f32 %v1935_v9, %v3501_v0  ;;  %v1925_v48 = vmul.f32 %v1924_v52, %v3501_v0 }
 0x792   : > { %2720 = vrcp.f32 %v1899_v53  ;;  %v1911_v7 = vand.u32 2147483648, %v1899_v53  ;;  %v1909_v60 = vand.u32 2147483647, %v1899_v53  ;;  %vm1905_vm9 = vweird.f32 %v1899_v53 }
 0x793   : > { %2043 = vmatmul.bf16.vlgmr.msra.gmra.mxu3 %v1965_v49  ;;  %v1937_v36 = vadd.f32 0.4994258, %v1936_v33  ;;  %v1926_v59 = vadd.f32 0.18741608, %v1925_v48  ;;  %v1889_v50 = vmul.f32 %v1888_v1, %v3482_v32 }
 0x794   : > { %v1912_v22 = vor.u32 1.1754944e-38, %v1911_v7  ;;  %vm1910_vm11 = vcmp.eq.f32.partialorder %v1909_v60, 8.507059e+37 }
 0x795   : > { %v1938_v55 = vmul.f32 %v1937_v36, %v3501_v0  ;;  %v1927_v26 = vmul.f32 %v1926_v59, %v3501_v0 }
 0x797   : > { %v1939_v34 = vadd.f32 1.0, %v1938_v55  ;;  %v1928_v12 = vadd.f32 1.1283791, %v1927_v26 }
 0x798   : > { %v2721_v56 = vpop.eup %2720 }
 0x799   : > { %v1901_v17 = vmul.f32 %v2721_v56, %v1899_v53  ;;  %2722 = vrcp.f32 %v1939_v34  ;;  %vm1906_vm8 = vweird.f32 %v2721_v56  ;;  %v1951_v13 = vand.u32 2147483648, %v1939_v34 }
 0x79a   : > { %vm1907_vm10 = vmor %vm1905_vm9, %vm1906_vm8  ;;  %v1949_v16 = vand.u32 2147483647, %v1939_v34  ;;  %vm1945_vm13 = vweird.f32 %v1939_v34  ;;  %v1929_v0 = vmul.f32 %v1928_v12, %v3494_v57  ;;  %v2633_v57 = vld [vmem:[%s735_s27] ss:$0 sm:$0xff] }
 0x79b   : > { %v1902_v43 = vsub.f32 1.0, %v1901_v17  ;;  %v1952_v25 = vor.u32 1.1754944e-38, %v1951_v13 }
 0x79c   : > { %vm1950_vm15 = vcmp.eq.f32.partialorder %v1949_v16, 8.507059e+37 }
 0x79d   : > { %v1903_v45 = vmul.f32 %v2721_v56, %v1902_v43 }
 0x79f   : > { %v1904_v38 = vadd.f32 %v2721_v56, %v1903_v45  ;;  %v2723_v6 = vpop.eup %2722 }
 0x7a0   : > { %v1941_v8 = vmul.f32 %v2723_v6, %v1939_v34  ;;  %vm1946_vm12 = vweird.f32 %v2723_v6 }
 0x7a1   : > { %v1908_v42 = vsel %vm1907_vm10, %v2721_v56, %v1904_v38  ;;  %vm1947_vm14 = vmor %vm1945_vm13, %vm1946_vm12 }
 0x7a2   : > { %v1913_v11 = vsel %vm1910_vm11, %v1912_v22, %v1908_v42  ;;  %v1942_v46 = vsub.f32 1.0, %v1941_v8 }
 0x7a3   : > { %v1914_v14 = vmul.f32 %v1913_v11, %v1889_v50 }
 0x7a4   : > { %v1943_v15 = vmul.f32 %v2723_v6, %v1942_v46 }
 0x7a5   : > { %v2474_v47 = vclamps-f32 %v1914_v14, 1.0 }
 0x7a6   : > { %v1944_v18 = vadd.f32 %v2723_v6, %v1943_v15 }
 0x7a7   : > { %v1959_v27 = vadd.f32 1.0, %v2474_v47 }
 0x7a8   : > { %v1948_v20 = vsel %vm1947_vm14, %v2723_v6, %v1944_v18 }
 0x7a9   : > { %v1953_v21 = vsel %vm1950_vm15, %v1952_v25, %v1948_v20  ;;  %v1963_v58 = vmul.f32 %v1959_v27, %v1791_v30 }
 0x7aa   : > { %v1954_v23 = vmul.f32 %v1953_v21, %v1929_v0 }
 0x7ac   : > { %v2475_v32 = vclamps-f32 %v1954_v23, 1.0 }
 0x7ae   : > { %v1960_v35 = vadd.f32 1.0, %v2475_v32 }
 0x7b0   : > { %v1964_v62 = vmul.f32 %v1960_v35, %v1792_v40 }
 0x7b2   : > { %v1966_v37 = vpack.c.bf16 %v1964_v62, %v1963_v58 }
 0x7b4   : > { %2048 = vmatmul.bf16.gmra.mxu3 %v1966_v37 }
 0x816   : > { %v2044_v4 = vpop.f32.mrf.mxu3 }
 0x817   : > { %v2045_v41 = vadd.f32 %v2633_v57, %v2044_v4 }
 0x819   : > { %v2054_v63 = vadd.f32 %v2045_v41, %v3391_v10 }
 0x81b   : > { %2058 = vst.msk [vmem:[#allocation2] sm:$0xff] %vm763_vm1, %v2054_v63 }
 0x81e   : > { %v2046_v5 = vpop.f32.mrf.mxu3 }
 0x81f   : > { %v2047_v54 = vadd.f32 %v2633_v57, %v2046_v5 }
 0x821   : > { %v2055_v39 = vadd.f32 %v2047_v54, %v3395_v31 }
 0x823   : > { %2059 = vst.msk [vmem:[#allocation2 + $0x8] sm:$0xff] %vm763_vm1, %v2055_v39 }
 0x837   : > { %v2049_v2 = vpop.f32.mrf.mxu3 }
 0x838   : > { %v2050_v29 = vadd.f32 %v2633_v57, %v2049_v2 }
 0x83a   : > { %v2056_v53 = vadd.f32 %v2050_v29, %v3399_v61 }
 0x83c   : > { %2060 = vst.msk [vmem:[#allocation2 + $0x10] sm:$0xff] %vm763_vm1, %v2056_v53 }
 0x83f   : > { %v2051_v9 = vpop.f32.mrf.mxu3 }
 0x840   : > { %v2052_v49 = vadd.f32 %v2633_v57, %v2051_v9  ;;  %2065 = sbr.rel (%p2508_p1) target bundleno = 2533 (0x9e5), region = 100 }
 0x842   : > { %v2057_v51 = vadd.f32 %v2052_v49, %v3403_v3 }
 0x844   : > { %2061 = vst.msk [vmem:[#allocation2 + $0x18] sm:$0xff] %vm763_vm1, %v2057_v51 }
 0x845   : > { %v2074_v10 = vsel %vm763_vm1, %v2056_v53, 0.0  ;;  %v2068_v31 = vsel %vm763_vm1, %v2054_v63, 0.0  ;;  %v2077_v33 = vsel %vm763_vm1, %v2057_v51, 0.0  ;;  %v2071_v61 = vsel %vm763_vm1, %v2055_v39, 0.0  ;;  %v2542_v42 = vld [vmem:[%s3631_s14 + $0x8] sm:$0xff]  ;;  %v2541_v46 = vld [vmem:[%s3631_s14] sm:$0xff] }
 0x846   : > { %2075 = vadd.xlane.f32.xlu1 %v2074_v10  ;;  %2069 = vadd.xlane.f32.xlu0 %v2068_v31  ;;  %v2728_v49 = vld [vmem:[%s3662_s3] ss:$0 sm:$0xff]  ;;  %vm2217_vm13 = vcmask 392192  }
 0x847   : > { %2204 = vmatpush.bf16.msra.mxu0 %v2542_v42  ;;  %2543 = vmatpush.bf16.msra.mxu1 %v2542_v42 }
 0x84b   : > { %2205 = vmatpush.bf16.msra.mxu0 %v2541_v46  ;;  %2544 = vmatpush.bf16.msra.mxu1 %v2541_v46 }
 0x84e   : > { %2078 = vadd.xlane.f32.xlu1 %v2077_v33  ;;  %2072 = vadd.xlane.f32.xlu0 %v2071_v61 }
 0x8b9   : > { %v2076_v44 = vpop.xlane.xlu1 %2075  ;;  %v2070_v52 = vpop.xlane.xlu0 %2069 }
 0x8ba   : > { %v2082_v3 = vmul.f32 %v2076_v44, %v3135_v24  ;;  %v2080_v36 = vmul.f32 %v2070_v52, %v3135_v24  ;;  %v2729_v52 = vld [vmem:[%s3663_s19] ss:$0 sm:$0xff] }
 0x8bc   : > { %v3546_v55 = vsub.f32 %v2056_v53, %v2082_v3  ;;  %v3548_v56 = vsub.f32 %v2054_v63, %v2080_v36 }
 0x8be   : > { %v2090_v28 = vmul.f32 %v3546_v55, %v3546_v55  ;;  %v2088_v48 = vmul.f32 %v3548_v56, %v3548_v56 }
 0x8c0   : > { %v2098_v17 = vsel %vm763_vm1, %v2090_v28, 0.0  ;;  %v2092_v34 = vsel %vm763_vm1, %v2088_v48, 0.0 }
 0x8c1   : > { %v2079_v43 = vpop.xlane.xlu1 %2078  ;;  %2099 = vadd.xlane.f32.xlu0 %v2098_v17  ;;  %2093 = vadd.xlane.f32.xlu2 %v2092_v34  ;;  %v2073_v19 = vpop.xlane.xlu0 %2072 }
 0x8c2   : > { %v2083_v59 = vmul.f32 %v2079_v43, %v3135_v24  ;;  %v2081_v45 = vmul.f32 %v2073_v19, %v3135_v24 }
 0x8c4   : > { %v3558_v7 = vsub.f32 %v2057_v51, %v2083_v59  ;;  %v3560_v60 = vsub.f32 %v2055_v39, %v2081_v45 }
 0x8c6   : > { %v2091_v38 = vmul.f32 %v3558_v7, %v3558_v7  ;;  %v2089_v1 = vmul.f32 %v3560_v60, %v3560_v60 }
 0x8c8   : > { %v2101_v6 = vsel %vm763_vm1, %v2091_v38, 0.0  ;;  %v2095_v26 = vsel %vm763_vm1, %v2089_v1, 0.0 }
 0x8c9   : > { %2102 = vadd.xlane.f32.xlu1 %v2101_v6  ;;  %2096 = vadd.xlane.f32.xlu2 %v2095_v26 }
 0x934   : > { %v2094_v22 = vpop.xlane.xlu2 %2093  ;;  %v2100_v8 = vpop.xlane.xlu0 %2099 }
 0x935   : > { %v2104_v11 = vmul.f32 %v2094_v22, %v3135_v24  ;;  %v2106_v50 = vmul.f32 %v2100_v8, %v3135_v24 }
 0x937   : > { %v2108_v12 = vadd.f32 1e-05, %v2104_v11  ;;  %v2110_v13 = vadd.f32 1e-05, %v2106_v50 }
 0x939   : > { %2731 = vrsqrt.f32 %v2108_v12  ;;  %vm2138_vm3 = vweird.f32 %v2110_v13  ;;  %vm2118_vm4 = vweird.f32 %v2108_v12 }
 0x93a   : > { %2733 = vrsqrt.f32 %v2110_v13 }
 0x93c   : > { %v2103_v14 = vpop.xlane.xlu1 %2102  ;;  %v2097_v15 = vpop.xlane.xlu2 %2096 }
 0x93d   : > { %v2107_v16 = vmul.f32 %v2103_v14, %v3135_v24  ;;  %v2105_v18 = vmul.f32 %v2097_v15, %v3135_v24 }
 0x93f   : > { %v2732_v25 = vpop.eup %2731  ;;  %v2111_v0 = vadd.f32 1e-05, %v2107_v16  ;;  %v2109_v47 = vadd.f32 1e-05, %v2105_v18 }
 0x940   : > { %v2734_v20 = vpop.eup %2733  ;;  %v2113_v21 = vmul.f32 %v2732_v25, %v2108_v12  ;;  %vm2119_vm2 = vweird.f32 %v2732_v25 }
 0x941   : > { %v2133_v23 = vmul.f32 %v2734_v20, %v2110_v13  ;;  %2735 = vrsqrt.f32 %v2111_v0  ;;  %vm2139_vm0 = vweird.f32 %v2734_v20  ;;  %vm2120_vm6 = vmor %vm2118_vm4, %vm2119_vm2  ;;  %vm2148_vm9 = vweird.f32 %v2111_v0 }
 0x942   : > { %v2114_v32 = vmul.f32 %v2732_v25, %v2113_v21  ;;  %2737 = vrsqrt.f32 %v2109_v47  ;;  %vm2140_vm5 = vmor %vm2138_vm3, %vm2139_vm0  ;;  %vm2128_vm11 = vweird.f32 %v2109_v47 }
 0x943   : > { %v2134_v27 = vmul.f32 %v2734_v20, %v2133_v23 }
 0x944   : > { %v2115_v30 = vmul.f32 0.5, %v2114_v32 }
 0x945   : > { %v2135_v40 = vmul.f32 0.5, %v2134_v27 }
 0x946   : > { %v2116_v35 = vsub.f32 1.5, %v2115_v30 }
 0x947   : > { %v2736_v58 = vpop.eup %2735  ;;  %v2136_v62 = vsub.f32 1.5, %v2135_v40 }
 0x948   : > { %v2738_v37 = vpop.eup %2737  ;;  %v2143_v57 = vmul.f32 %v2736_v58, %v2111_v0  ;;  %v2117_v4 = vmul.f32 %v2732_v25, %v2116_v35  ;;  %vm2149_vm7 = vweird.f32 %v2736_v58 }
 0x949   : > { %v2137_v24 = vmul.f32 %v2734_v20, %v2136_v62  ;;  %v2123_v41 = vmul.f32 %v2738_v37, %v2109_v47  ;;  %vm2129_vm8 = vweird.f32 %v2738_v37  ;;  %vm2150_vm10 = vmor %vm2148_vm9, %vm2149_vm7 }
 0x94a   : > { %v2144_v63 = vmul.f32 %v2736_v58, %v2143_v57  ;;  %v2121_v29 = vsel %vm2120_vm6, %v2732_v25, %v2117_v4  ;;  %vm2130_vm12 = vmor %vm2128_vm11, %vm2129_vm8 }
 0x94b   : > { %v2124_v5 = vmul.f32 %v2738_v37, %v2123_v41  ;;  %v2141_v54 = vsel %vm2140_vm5, %v2734_v20, %v2137_v24  ;;  %v2152_v31 = vmul.f32 %v2121_v29, %v3548_v56 }
 0x94c   : > { %v2145_v39 = vmul.f32 0.5, %v2144_v63  ;;  %v2154_v51 = vmul.f32 %v2141_v54, %v3546_v55 }
 0x94d   : > { %v2125_v2 = vmul.f32 0.5, %v2124_v5  ;;  %v2159_v55 = vmul.f32 %v2728_v49, %v2152_v31 }
 0x94e   : > { %v2146_v53 = vsub.f32 1.5, %v2145_v39  ;;  %v2161_v36 = vmul.f32 %v2728_v49, %v2154_v51 }
 0x94f   : > { %v2126_v9 = vsub.f32 1.5, %v2125_v2  ;;  %v2166_v43 = vadd.f32 %v2729_v52, %v2159_v55 }
 0x950   : > { %v2147_v10 = vmul.f32 %v2736_v58, %v2146_v53  ;;  %v2168_v34 = vadd.f32 %v2729_v52, %v2161_v36 }
 0x951   : > { %v2127_v33 = vmul.f32 %v2738_v37, %v2126_v9 }
 0x952   : > { %v2151_v61 = vsel %vm2150_vm10, %v2736_v58, %v2147_v10 }
 0x953   : > { %v2131_v44 = vsel %vm2130_vm12, %v2738_v37, %v2127_v33  ;;  %v2155_v3 = vmul.f32 %v2151_v61, %v3558_v7  ;;  %v2730_v7 = vld [vmem:[%s3664_s20] ss:$0 sm:$0xff] }
 0x954   : > { %v2153_v28 = vmul.f32 %v2131_v44, %v3560_v60 }
 0x955   : > { %v2162_v48 = vmul.f32 %v2728_v49, %v2155_v3 }
 0x956   : > { %v2160_v17 = vmul.f32 %v2728_v49, %v2153_v28 }
 0x957   : > { %v2169_v56 = vadd.f32 %v2729_v52, %v2162_v48 }
 0x958   : > { %v2167_v19 = vadd.f32 %v2729_v52, %v2160_v17 }
 0x959   : > { %v2171_v59 = vpack.c.bf16 %v2169_v56, %v2168_v34 }
 0x95a   : > { %v2170_v45 = vpack.c.bf16 %v2167_v19, %v2166_v43 }
 0x95b   : > { %2518 = vmatmul.msk.bf16.vlgmr.msra.gmra.mxu1 %vm763_vm1, %v2171_v59 }
 0x95c   : > { %2517 = vmatmul.msk.bf16.vlgmr.msra.gmra.mxu0 %vm763_vm1, %v2170_v45 }
 0x9d8   : > { %v2212_v38 = vpop.f32.mrf.mxu1 }
 0x9d9   : > { %v2207_v60 = vpop.f32.mrf.mxu0  ;;  %v2213_v1 = vadd.f32 %v2730_v7, %v2212_v38 }
 0x9da   : > { %v2208_v6 = vadd.f32 %v2730_v7, %v2207_v60 }
 0x9db   : > { %2220 = vst.msk [vmem:[#allocation8 + $0x10] sm:$0xff] %vm2217_vm13, %v2213_v1 }
 0x9dc   : > { %2218 = vst.msk [vmem:[#allocation8] sm:$0xff] %vm2217_vm13, %v2208_v6 }
 0x9e0   : > { %v2214_v26 = vpop.f32.mrf.mxu1 }
 0x9e1   : > { %v2209_v42 = vpop.f32.mrf.mxu0  ;;  %v2215_v22 = vadd.f32 %v2730_v7, %v2214_v26 }
 0x9e2   : > { %v2210_v8 = vadd.f32 %v2730_v7, %v2209_v42 }
 0x9e3   : > { %2221 = vst.msk [vmem:[#allocation8 + $0x18] sm:$0xff] %vm2217_vm13, %v2215_v22 }
 0x9e4   : > { %2219 = vst.msk [vmem:[#allocation8 + $0x8] sm:$0xff] %vm2217_vm13, %v2210_v8 }
 0x9e5 PF: > { %s3665_s4 = sadd.s32 4294967295, %s2885_s26   ;;  %s3666_s5 = sld [smem:[#allocation24_spill]] }
 0x9e6   : > { %p2561_p2 = scmp.eq.s32.totalorder %s3665_s4, 1  ;;  %s2902_s16 = smov [#allocation8]  }
 0x9e7   : > { %s2231_s24 = sshll.u32 %s2902_s16, 4  ;;  %s2903_s28 = smov 128   ;;  %s2232_s24 = int_to_ptr.vmem [resolvable:$true] %s2231_s24 }
 0x9eb   : > { %s2233_s0 = sshll.u32 %s3666_s5, 4  ;;  %s2234_s0 = int_to_ptr.hbm [resolvable:$true] %s2233_s0 }
 0x9ec   : > { %2550 = dma.vmem_to_hbm [thread:$0]  (%p2561_p2), %s2232_s24, 512, %s2234_s0, [#allocation5], %s2903_s28, %s2903_s28, %s2899_s23  }
 0x9ed   : > { %2860 = dma.done.wait (%p2561_p2), [#allocation5], 512  }
 0x9ee   : > { %2862 = vsyncadd (%p2561_p2), [#allocation5], 4294966784 }
 0x9ef PF: > { %s33_s26 = sadd.s32 1, %s2885_s26   ;;  %s3667_s27 = sld [smem:[#allocation12_spill]] }
 0x9f0   : > { %p30_p3 = scmp.ge.s32.totalorder %s33_s26, 4   ;;  %s3668_s23 = sld [smem:[#allocation15_spill]] }
 0x9f1   : > { %s3669_s24 = sld [smem:[#allocation13_spill]]  ;;  %s3671_s21 = smov %s2869_s22 }
 0x9f2   : > { %s3670_s25 = sld [smem:[#allocation14_spill]]  ;;  %32 = sbr.rel (!%p30_p3) target bundleno = 17 (0x11), region = 170 }
 0x9f5   : > { %s3672_s22 = smov %s3667_s27 }
 0x9f7   :  { %2250 = vsyncpa [#allocation4], 1 }
 0x9f8   :  { %2252 = vsyncpa [#allocation4 + $0x1], 1 }
 0x9f9   :  { %2253 = vsyncpa [#allocation7], 1 }
 0x9fa   :  { %2255 = vsyncpa [#allocation7 + $0x1], 1 }
 0x9fb   :  { %2256 = vsyncpa [#allocation5], 1 }
 0x9fc   :  { %2258 = vsyncpa [#allocation5 + $0x1], 1 }

</bundles_post_ra>
